<compile_context>
chip_gen: v6e
topology: v6e:2x2x1
jax: 0.10.0
libtpu: 0.0.40
codegen_flags: <defaults>
</compile_context>

<pallas_src>
import math

import numpy as np
import jax
import jax.numpy as jnp
from jax.experimental import pallas as pl
from jax.experimental.pallas import tpu as pltpu


VGG_CONFIG = dict(
    input_size=16, num_classes=10,
    conv_channels=[8, 16], max_pool_sizes=[2, 2],
    fc_layers=[32, 16], conv_batch_norm=False,
)


# --------------------------- fused forward kernel ---------------------------

def _vgg_kernel(x_ref, b0_ref, bias0_ref, pe_ref, po_ref, se_ref, so_ref,
                b1_ref, bias1_ref, wf_ref, bf_ref, we_ref, be_ref,
                o_ref, p0_ref, p1_ref):
    # x_ref: (TN, H0, W0*Cin) lane-dense input slab (lane = w*Cin + c).
    TN, H0, L0 = x_ref.shape
    H1 = H0 // 2

    x = x_ref[...]

    # ---- ConvBlock0: build im2col patches (halo-only zeroing), 1 MXU matmul.
    p0_ref[:, :, L0:2 * L0] = x                                   # kh=1 (center)
    p0_ref[:, 1:H0, 0:L0] = x[:, :H0 - 1, :]                      # kh=0 (row h-1)
    p0_ref[:, 0:1, 0:L0] = jnp.zeros((TN, 1, L0), jnp.float32)    # top halo
    p0_ref[:, :H0 - 1, 2 * L0:3 * L0] = x[:, 1:, :]               # kh=2 (row h+1)
    p0_ref[:, H0 - 1:H0, 2 * L0:3 * L0] = jnp.zeros((TN, 1, L0), jnp.float32)

    y0 = jnp.dot(p0_ref[...].reshape(TN * H0, 3 * L0), b0_ref[...],
                 preferred_element_type=jnp.float32) + bias0_ref[...]
    y0 = jnp.maximum(y0, 0.0)                       # (TN*16, 128), lane = w*C1+c

    # ---- MaxPool2d(2) as selection matmuls (no lane/sublane shuffles).
    rmax = jnp.maximum(
        jnp.dot(pe_ref[...], y0, preferred_element_type=jnp.float32),
        jnp.dot(po_ref[...], y0, preferred_element_type=jnp.float32))
    pooled = jnp.maximum(
        jnp.dot(rmax, se_ref[...], preferred_element_type=jnp.float32),
        jnp.dot(rmax, so_ref[...], preferred_element_type=jnp.float32))
    L1 = pooled.shape[1]                            # W1*C1 = 64
    pooled = pooled.reshape(TN, H1, L1)

    # ---- ConvBlock1: im2col patches + 1 MXU matmul + ReLU.
    p1_ref[:, :, L1:2 * L1] = pooled
    p1_ref[:, 1:H1, 0:L1] = pooled[:, :H1 - 1, :]
    p1_ref[:, 0:1, 0:L1] = jnp.zeros((TN, 1, L1), jnp.float32)
    p1_ref[:, :H1 - 1, 2 * L1:3 * L1] = pooled[:, 1:, :]
    p1_ref[:, H1 - 1:H1, 2 * L1:3 * L1] = jnp.zeros((TN, 1, L1), jnp.float32)

    y1 = jnp.dot(p1_ref[...].reshape(TN * H1, 3 * L1), b1_ref[...],
                 preferred_element_type=jnp.float32) + bias1_ref[...]
    y1 = jnp.maximum(y1, 0.0)                       # (TN*8, 128), lane = w1*C2+c

    # ---- FC stack.  AdaptiveAvgPool2d(4)+flatten+fc0 folded into wf,
    #      end0+end1 folded into we.  Dropout(0.5) = identity (eval mode).
    flat = y1.reshape(TN, H1 * y1.shape[1])         # (TN, 1024)
    h = jnp.maximum(
        jnp.dot(flat, wf_ref[...], preferred_element_type=jnp.float32) + bf_ref[...],
        0.0)                                        # (TN, 32)
    out = jnp.dot(h, we_ref[...], preferred_element_type=jnp.float32) + be_ref[...]
    o_ref[...] = out.reshape(TN, 1, out.shape[1])


# --------------------------------- wrapper -----------------------------------

_WEIGHT_NAMES = ["b0cat", "bias0", "pe", "po", "se", "so",
                 "b1cat", "bias1", "wfc0", "bfc0", "wend", "bend"]


def vgg_forward(packed, x_nchw, *, batch_tile=1):
    N, Cin, H, W = x_nchw.shape
    TN = batch_tile
    assert N % TN == 0, "batch must be divisible by batch_tile"
    # TODO(synk): NCHW->NHWC packing is one tiny fused XLA op per call; fold it
    # into the input pipeline (accept NHWC) for large batches.
    x = jnp.transpose(x_nchw.astype(jnp.float32), (0, 2, 3, 1)).reshape(N, H, W * Cin)

    C1 = packed["bias0"].shape[1] // W
    H1, W1 = H // 2, W // 2
    ncls = packed["wend"].shape[1]

    def wspec(a):                           # weights: DMA'd once, VMEM-resident
        z = (0,) * a.ndim
        return pl.BlockSpec(a.shape, lambda i, z=z: z)

    in_specs = [pl.BlockSpec((TN, H, W * Cin), lambda i: (i, 0, 0))]
    in_specs += [wspec(packed[k]) for k in _WEIGHT_NAMES]

    out = pl.pallas_call(
        _vgg_kernel,
        out_shape=jax.ShapeDtypeStruct((N, 1, ncls), jnp.float32),
        grid=(N // TN,),
        in_specs=in_specs,
        out_specs=pl.BlockSpec((TN, 1, ncls), lambda i: (i, 0, 0)),
        scratch_shapes=[
            pltpu.VMEM((TN, H, 3 * W * Cin), jnp.float32),    # conv0 im2col patches
            pltpu.VMEM((TN, H1, 3 * W1 * C1), jnp.float32),   # conv1 im2col patches
        ],
        compiler_params=pltpu.CompilerParams(
            dimension_semantics=("parallel",)),
    )(x, *[packed[k] for k in _WEIGHT_NAMES])
    return out.reshape(N, ncls)


# ------------------- parameter init (PyTorch layout/semantics) ---------------

def init_torch_params(key, cfg):
    """Matches VGG.initialize_weights(): Conv2d N(0, sqrt(2/(9*out_ch))), bias 0;
    Linear N(0, 0.01), bias 0.  Weights kept in PyTorch layouts."""
    C1, C2 = cfg["conv_channels"]
    fc0, fc1 = cfg["fc_layers"]
    ncls = cfg["num_classes"]
    Hp = cfg["input_size"] // 4                      # 4 (pooled spatial)
    fc_in = Hp * Hp * C2                             # 256

    ks = jax.random.split(key, 5)
    p = {}
    p["conv0_w"] = math.sqrt(2.0 / (9 * C1)) * jax.random.normal(ks[0], (C1, 3, 3, 3), jnp.float32)
    p["conv0_b"] = jnp.zeros((C1,), jnp.float32)
    p["conv1_w"] = math.sqrt(2.0 / (9 * C2)) * jax.random.normal(ks[1], (C2, C1, 3, 3), jnp.float32)
    p["conv1_b"] = jnp.zeros((C2,), jnp.float32)
    p["fc0_w"] = 0.01 * jax.random.normal(ks[2], (fc0, fc_in), jnp.float32)
    p["fc0_b"] = jnp.zeros((fc0,), jnp.float32)
    p["end0_w"] = 0.01 * jax.random.normal(ks[3], (fc1, fc0), jnp.float32)
    p["end0_b"] = jnp.zeros((fc1,), jnp.float32)
    p["end1_w"] = 0.01 * jax.random.normal(ks[4], (ncls, fc1), jnp.float32)
    p["end1_b"] = jnp.zeros((ncls,), jnp.float32)
    return p


# ------------------ init-time packing (Toeplitz / folding) -------------------

def _conv_toeplitz(w_oihw, W):
    """3x3 'same'-pad conv as one matmul: (3*W*Cin, W*Cout) block-Toeplitz weight.
    Patch lane order: [kh block][w_in*Cin + c]; output lane order: w_out*Cout + co."""
    Cout, Cin, KH, KW = w_oihw.shape
    w = np.transpose(np.asarray(w_oihw, np.float32), (2, 3, 1, 0))   # HWIO
    B = np.zeros((KH, W * Cin, W * Cout), np.float32)
    for kh in range(KH):
        for kw in range(KW):
            for wo in range(W):
                wi = wo + kw - 1
                if 0 <= wi < W:
                    B[kh, wi * Cin:(wi + 1) * Cin, wo * Cout:(wo + 1) * Cout] = w[kh, kw]
    return B.reshape(KH * W * Cin, W * Cout)


def _maxpool_selectors(TN, H, W, C):
    """0/1 selection matrices implementing MaxPool2d(2) as matmuls on the
    (TN*H, W*C) slab: rows via left-multiplies, lanes via right-multiplies."""
    R = TN * H
    pe = np.zeros((R // 2, R), np.float32)
    po = np.zeros((R // 2, R), np.float32)
    idx = np.arange(R // 2)
    pe[idx, 2 * idx] = 1.0
    po[idx, 2 * idx + 1] = 1.0
    L = W * C
    se = np.zeros((L, L // 2), np.float32)
    so = np.zeros((L, L // 2), np.float32)
    for wo in range(W // 2):
        for c in range(C):
            se[(2 * wo) * C + c, wo * C + c] = 1.0
            so[(2 * wo + 1) * C + c, wo * C + c] = 1.0
    return pe, po, se, so


def _fold_avgpool_flatten_fc0(fc0_w_pt, H1, W1, C2):
    """Fold AdaptiveAvgPool2d((H1/2,W1/2)) + PyTorch NCHW flatten + Linear into a
    single (H1*W1*C2, fc_out) weight acting on the (rows=h1, lanes=w1*C2+c) slab.
    Exact 2x2 average pool (valid for the 8x8 pre-pool map of input_size=16)."""
    fc_out = fc0_w_pt.shape[0]
    Hp, Wp = H1 // 2, W1 // 2
    w = np.asarray(fc0_w_pt, np.float32)
    Wf = np.zeros((H1, W1 * C2, fc_out), np.float32)
    for h1 in range(H1):
        for w1 in range(W1):
            for c in range(C2):
                Wf[h1, w1 * C2 + c, :] = 0.25 * w[:, c * Hp * Wp + (h1 // 2) * Wp + (w1 // 2)]
    return Wf.reshape(H1 * W1 * C2, fc_out)


def pack_params(tp, cfg, batch_tile):
    H = W = cfg["input_size"]
    C1, C2 = cfg["conv_channels"]
    H1, W1 = H // 2, W // 2
    fc0_out = cfg["fc_layers"][0]
    ncls = cfg["num_classes"]

    packed = {}
    packed["b0cat"] = jnp.asarray(_conv_toeplitz(tp["conv0_w"], W))           # (144,128)
    packed["bias0"] = jnp.asarray(np.tile(np.asarray(tp["conv0_b"], np.float32), W)
                                  .reshape(1, W * C1))
    packed["b1cat"] = jnp.asarray(_conv_toeplitz(tp["conv1_w"], W1))          # (192,128)
    packed["bias1"] = jnp.asarray(np.tile(np.asarray(tp["conv1_b"], np.float32), W1)
                                  .reshape(1, W1 * C2))

    pe, po, se, so = _maxpool_selectors(batch_tile, H, W, C1)
    packed["pe"], packed["po"] = jnp.asarray(pe), jnp.asarray(po)
    packed["se"], packed["so"] = jnp.asarray(se), jnp.asarray(so)

    packed["wfc0"] = jnp.asarray(_fold_avgpool_flatten_fc0(tp["fc0_w"], H1, W1, C2))  # (1024,32)
    packed["bfc0"] = jnp.asarray(np.asarray(tp["fc0_b"], np.float32).reshape(1, fc0_out))

    # Fold end0 + end1 (Dropout = identity, no nonlinearity between them).
    A = np.asarray(tp["end0_w"], np.float32); a = np.asarray(tp["end0_b"], np.float32)
    B = np.asarray(tp["end1_w"], np.float32); b = np.asarray(tp["end1_b"], np.float32)
    packed["wend"] = jnp.asarray(A.T @ B.T)                                   # (32,10)
    packed["bend"] = jnp.asarray((a @ B.T + b).reshape(1, ncls))
    return packed


# ------------------------- pure-JAX reference (check) -------------------------

def vgg_reference(p, x_nchw):
    x = x_nchw.astype(jnp.float32)

    def conv_relu(x, w, b):
        y = jax.lax.conv_general_dilated(
            x, w, (1, 1), ((1, 1), (1, 1)),
            dimension_numbers=("NCHW", "OIHW", "NCHW"))
        return jax.nn.relu(y + b.reshape(1, -1, 1, 1))

    x = conv_relu(x, p["conv0_w"], p["conv0_b"])
    x = jax.lax.reduce_window(x, -jnp.inf, jax.lax.max, (1, 1, 2, 2), (1, 1, 2, 2), "VALID")
    x = conv_relu(x, p["conv1_w"], p["conv1_b"])
    x = jax.lax.reduce_window(x, 0.0, jax.lax.add, (1, 1, 2, 2), (1, 1, 2, 2), "VALID") * 0.25
    x = x.reshape(x.shape[0], -1)                       # PyTorch NCHW flatten order
    x = jax.nn.relu(x @ p["fc0_w"].T + p["fc0_b"])      # Dropout = identity (eval)
    x = x @ p["end0_w"].T + p["end0_b"]
    x = x @ p["end1_w"].T + p["end1_b"]
    return x


# ----------------------------------- main -------------------------------------

if __name__ == "__main__":
    BATCH_TILE = 1                                     # per-grid-step batch tile
    key = jax.random.PRNGKey(0)
    pkey, xkey = jax.random.split(key)

    torch_params = init_torch_params(pkey, VGG_CONFIG)
    packed = pack_params(torch_params, VGG_CONFIG, batch_tile=BATCH_TILE)

    x = jax.random.normal(xkey, (2, 3, 16, 16), jnp.float32)   # NCHW, like PyTorch

    fwd = jax.jit(lambda p, xx: vgg_forward(p, xx, batch_tile=BATCH_TILE))
    out = jax.block_until_ready(fwd(packed, x))

    ref = vgg_reference(torch_params, x)
    assert out.shape == (2, VGG_CONFIG["num_classes"]), out.shape
    max_err = float(jnp.max(jnp.abs(out - ref)))
    assert max_err < 1e-4, f"max abs err {max_err}"

    print("KERNEL_OK")
</pallas_src>

<mosaic_0001>
module attributes {stable_mosaic.version = 11 : i64} {
  func.func @_vgg_kernel(%arg0: i32, %arg1: memref<1x16x48xf32, #tpu.memory_space<vmem>>, %arg2: memref<144x128xf32, #tpu.memory_space<vmem>>, %arg3: memref<1x128xf32, #tpu.memory_space<vmem>>, %arg4: memref<8x16xf32, #tpu.memory_space<vmem>>, %arg5: memref<8x16xf32, #tpu.memory_space<vmem>>, %arg6: memref<128x64xf32, #tpu.memory_space<vmem>>, %arg7: memref<128x64xf32, #tpu.memory_space<vmem>>, %arg8: memref<192x128xf32, #tpu.memory_space<vmem>>, %arg9: memref<1x128xf32, #tpu.memory_space<vmem>>, %arg10: memref<1024x32xf32, #tpu.memory_space<vmem>>, %arg11: memref<1x32xf32, #tpu.memory_space<vmem>>, %arg12: memref<32x10xf32, #tpu.memory_space<vmem>>, %arg13: memref<1x10xf32, #tpu.memory_space<vmem>>, %arg14: memref<1x1x10xf32, #tpu.memory_space<vmem>>, %arg15: memref<1x16x144xf32, #tpu.memory_space<vmem>>, %arg16: memref<1x8x192xf32, #tpu.memory_space<vmem>>) attributes {dimension_semantics = [#tpu.dimension_semantics<parallel>], iteration_bounds = array<i64: 2>, scalar_prefetch = 0 : i64, scratch_operands = 2 : i64, tpu.core_type = #tpu.core_type<tc>, window_params = [{transform_indices = @transform_0, window_bounds = array<i64: 1, 16, 48>}, {pipeline_mode = #tpu.pipeline_mode<synchronous>, transform_indices = @transform_1, window_bounds = array<i64: 144, 128>}, {pipeline_mode = #tpu.pipeline_mode<synchronous>, transform_indices = @transform_2, window_bounds = array<i64: 1, 128>}, {pipeline_mode = #tpu.pipeline_mode<synchronous>, transform_indices = @transform_3, window_bounds = array<i64: 8, 16>}, {pipeline_mode = #tpu.pipeline_mode<synchronous>, transform_indices = @transform_4, window_bounds = array<i64: 8, 16>}, {pipeline_mode = #tpu.pipeline_mode<synchronous>, transform_indices = @transform_5, window_bounds = array<i64: 128, 64>}, {pipeline_mode = #tpu.pipeline_mode<synchronous>, transform_indices = @transform_6, window_bounds = array<i64: 128, 64>}, {pipeline_mode = #tpu.pipeline_mode<synchronous>, transform_indices = @transform_7, window_bounds = array<i64: 192, 128>}, {pipeline_mode = #tpu.pipeline_mode<synchronous>, transform_indices = @transform_8, window_bounds = array<i64: 1, 128>}, {pipeline_mode = #tpu.pipeline_mode<synchronous>, transform_indices = @transform_9, window_bounds = array<i64: 1024, 32>}, {pipeline_mode = #tpu.pipeline_mode<synchronous>, transform_indices = @transform_10, window_bounds = array<i64: 1, 32>}, {pipeline_mode = #tpu.pipeline_mode<synchronous>, transform_indices = @transform_11, window_bounds = array<i64: 32, 10>}, {pipeline_mode = #tpu.pipeline_mode<synchronous>, transform_indices = @transform_12, window_bounds = array<i64: 1, 10>}, {transform_indices = @transform_13, window_bounds = array<i64: 1, 1, 10>}]} {
    %c0 = arith.constant 0 : index
    %c0_0 = arith.constant 0 : index
    %c0_1 = arith.constant 0 : index
    %0 = vector.load %arg1[%c0, %c0_0, %c0_1] : memref<1x16x48xf32, #tpu.memory_space<vmem>>, vector<1x16x48xf32>
    %c0_2 = arith.constant 0 : index
    %c0_3 = arith.constant 0 : index
    %c48 = arith.constant 48 : index
    %1 = vector.load %arg15[%c0_2, %c0_3, %c48] : memref<1x16x144xf32, #tpu.memory_space<vmem>>, vector<1x16x48xf32>
    tpu.vector_store %arg15[%c0_2, %c0_3, %c48], %0 {strides = array<i32>} : memref<1x16x144xf32, #tpu.memory_space<vmem>>, vector<1x16x48xf32>,
    %2 = vector.extract_strided_slice %0 {offsets = [0, 0, 0], sizes = [1, 15, 48], strides = [1, 1, 1]} : vector<1x16x48xf32> to vector<1x15x48xf32>
    %c0_4 = arith.constant 0 : index
    %c1 = arith.constant 1 : index
    %c0_5 = arith.constant 0 : index
    %3 = vector.load %arg15[%c0_4, %c1, %c0_5] : memref<1x16x144xf32, #tpu.memory_space<vmem>>, vector<1x15x48xf32>
    tpu.vector_store %arg15[%c0_4, %c1, %c0_5], %2 {strides = array<i32>} : memref<1x16x144xf32, #tpu.memory_space<vmem>>, vector<1x15x48xf32>,
    %cst = arith.constant 0.000000e+00 : f32
    %4 = vector.broadcast %cst : f32 to vector<1x1x48xf32>
    %c0_6 = arith.constant 0 : index
    %c0_7 = arith.constant 0 : index
    %c0_8 = arith.constant 0 : index
    %5 = vector.load %arg15[%c0_6, %c0_7, %c0_8] : memref<1x16x144xf32, #tpu.memory_space<vmem>>, vector<1x1x48xf32>
    tpu.vector_store %arg15[%c0_6, %c0_7, %c0_8], %4 {strides = array<i32>} : memref<1x16x144xf32, #tpu.memory_space<vmem>>, vector<1x1x48xf32>,
    %6 = vector.extract_strided_slice %0 {offsets = [0, 1, 0], sizes = [1, 15, 48], strides = [1, 1, 1]} : vector<1x16x48xf32> to vector<1x15x48xf32>
    %c0_9 = arith.constant 0 : index
    %c0_10 = arith.constant 0 : index
    %c96 = arith.constant 96 : index
    %7 = vector.load %arg15[%c0_9, %c0_10, %c96] : memref<1x16x144xf32, #tpu.memory_space<vmem>>, vector<1x15x48xf32>
    tpu.vector_store %arg15[%c0_9, %c0_10, %c96], %6 {strides = array<i32>} : memref<1x16x144xf32, #tpu.memory_space<vmem>>, vector<1x15x48xf32>,
    %cst_11 = arith.constant 0.000000e+00 : f32
    %8 = vector.broadcast %cst_11 : f32 to vector<1x1x48xf32>
    %c0_12 = arith.constant 0 : index
    %c15 = arith.constant 15 : index
    %c96_13 = arith.constant 96 : index
    %9 = vector.load %arg15[%c0_12, %c15, %c96_13] : memref<1x16x144xf32, #tpu.memory_space<vmem>>, vector<1x1x48xf32>
    tpu.vector_store %arg15[%c0_12, %c15, %c96_13], %8 {strides = array<i32>} : memref<1x16x144xf32, #tpu.memory_space<vmem>>, vector<1x1x48xf32>,
    %c0_14 = arith.constant 0 : index
    %c0_15 = arith.constant 0 : index
    %c0_16 = arith.constant 0 : index
    %10 = vector.load %arg15[%c0_14, %c0_15, %c0_16] : memref<1x16x144xf32, #tpu.memory_space<vmem>>, vector<1x16x144xf32>
    %11 = vector.shape_cast %10 : vector<1x16x144xf32> to vector<16x144xf32>
    %c0_17 = arith.constant 0 : index
    %c0_18 = arith.constant 0 : index
    %12 = vector.load %arg2[%c0_17, %c0_18] : memref<144x128xf32, #tpu.memory_space<vmem>>, vector<144x128xf32>
    %cst_19 = arith.constant dense<0.000000e+00> : vector<16x128xf32>
    %13 = tpu.matmul %11, %12, %cst_19 {dimension_numbers = #tpu.dot_dimension_numbers<[1], [0], [0], [1], [0, 0, 1, 1], [], []>} : vector<16x144xf32>, vector<144x128xf32>, vector<16x128xf32> -> vector<16x128xf32>
    %c0_20 = arith.constant 0 : index
    %c0_21 = arith.constant 0 : index
    %14 = vector.load %arg3[%c0_20, %c0_21] : memref<1x128xf32, #tpu.memory_space<vmem>>, vector<1x128xf32>
    %15 = vector.broadcast %14 : vector<1x128xf32> to vector<16x128xf32>
    %16 = arith.addf %13, %15 : vector<16x128xf32>
    %cst_22 = arith.constant 0.000000e+00 : f32
    %17 = vector.broadcast %cst_22 : f32 to vector<16x128xf32>
    %18 = arith.maximumf %16, %17 : vector<16x128xf32>
    %c0_23 = arith.constant 0 : index
    %c0_24 = arith.constant 0 : index
    %19 = vector.load %arg4[%c0_23, %c0_24] : memref<8x16xf32, #tpu.memory_space<vmem>>, vector<8x16xf32>
    %cst_25 = arith.constant dense<0.000000e+00> : vector<8x128xf32>
    %20 = tpu.matmul %19, %18, %cst_25 {dimension_numbers = #tpu.dot_dimension_numbers<[1], [0], [0], [1], [0, 0, 1, 1], [], []>} : vector<8x16xf32>, vector<16x128xf32>, vector<8x128xf32> -> vector<8x128xf32>
    %c0_26 = arith.constant 0 : index
    %c0_27 = arith.constant 0 : index
    %21 = vector.load %arg5[%c0_26, %c0_27] : memref<8x16xf32, #tpu.memory_space<vmem>>, vector<8x16xf32>
    %cst_28 = arith.constant dense<0.000000e+00> : vector<8x128xf32>
    %22 = tpu.matmul %21, %18, %cst_28 {dimension_numbers = #tpu.dot_dimension_numbers<[1], [0], [0], [1], [0, 0, 1, 1], [], []>} : vector<8x16xf32>, vector<16x128xf32>, vector<8x128xf32> -> vector<8x128xf32>
    %23 = arith.maximumf %20, %22 : vector<8x128xf32>
    %c0_29 = arith.constant 0 : index
    %c0_30 = arith.constant 0 : index
    %24 = vector.load %arg6[%c0_29, %c0_30] : memref<128x64xf32, #tpu.memory_space<vmem>>, vector<128x64xf32>
    %cst_31 = arith.constant dense<0.000000e+00> : vector<8x64xf32>
    %25 = tpu.matmul %23, %24, %cst_31 {dimension_numbers = #tpu.dot_dimension_numbers<[1], [0], [0], [1], [0, 0, 1, 1], [], []>} : vector<8x128xf32>, vector<128x64xf32>, vector<8x64xf32> -> vector<8x64xf32>
    %c0_32 = arith.constant 0 : index
    %c0_33 = arith.constant 0 : index
    %26 = vector.load %arg7[%c0_32, %c0_33] : memref<128x64xf32, #tpu.memory_space<vmem>>, vector<128x64xf32>
    %cst_34 = arith.constant dense<0.000000e+00> : vector<8x64xf32>
    %27 = tpu.matmul %23, %26, %cst_34 {dimension_numbers = #tpu.dot_dimension_numbers<[1], [0], [0], [1], [0, 0, 1, 1], [], []>} : vector<8x128xf32>, vector<128x64xf32>, vector<8x64xf32> -> vector<8x64xf32>
    %28 = arith.maximumf %25, %27 : vector<8x64xf32>
    %29 = vector.shape_cast %28 : vector<8x64xf32> to vector<1x8x64xf32>
    %c0_35 = arith.constant 0 : index
    %c0_36 = arith.constant 0 : index
    %c64 = arith.constant 64 : index
    %30 = vector.load %arg16[%c0_35, %c0_36, %c64] : memref<1x8x192xf32, #tpu.memory_space<vmem>>, vector<1x8x64xf32>
    tpu.vector_store %arg16[%c0_35, %c0_36, %c64], %29 {strides = array<i32>} : memref<1x8x192xf32, #tpu.memory_space<vmem>>, vector<1x8x64xf32>,
    %31 = vector.extract_strided_slice %29 {offsets = [0, 0, 0], sizes = [1, 7, 64], strides = [1, 1, 1]} : vector<1x8x64xf32> to vector<1x7x64xf32>
    %c0_37 = arith.constant 0 : index
    %c1_38 = arith.constant 1 : index
    %c0_39 = arith.constant 0 : index
    %32 = vector.load %arg16[%c0_37, %c1_38, %c0_39] : memref<1x8x192xf32, #tpu.memory_space<vmem>>, vector<1x7x64xf32>
    tpu.vector_store %arg16[%c0_37, %c1_38, %c0_39], %31 {strides = array<i32>} : memref<1x8x192xf32, #tpu.memory_space<vmem>>, vector<1x7x64xf32>,
    %cst_40 = arith.constant 0.000000e+00 : f32
    %33 = vector.broadcast %cst_40 : f32 to vector<1x1x64xf32>
    %c0_41 = arith.constant 0 : index
    %c0_42 = arith.constant 0 : index
    %c0_43 = arith.constant 0 : index
    %34 = vector.load %arg16[%c0_41, %c0_42, %c0_43] : memref<1x8x192xf32, #tpu.memory_space<vmem>>, vector<1x1x64xf32>
    tpu.vector_store %arg16[%c0_41, %c0_42, %c0_43], %33 {strides = array<i32>} : memref<1x8x192xf32, #tpu.memory_space<vmem>>, vector<1x1x64xf32>,
    %35 = vector.extract_strided_slice %29 {offsets = [0, 1, 0], sizes = [1, 7, 64], strides = [1, 1, 1]} : vector<1x8x64xf32> to vector<1x7x64xf32>
    %c0_44 = arith.constant 0 : index
    %c0_45 = arith.constant 0 : index
    %c128 = arith.constant 128 : index
    %36 = vector.load %arg16[%c0_44, %c0_45, %c128] : memref<1x8x192xf32, #tpu.memory_space<vmem>>, vector<1x7x64xf32>
    tpu.vector_store %arg16[%c0_44, %c0_45, %c128], %35 {strides = array<i32>} : memref<1x8x192xf32, #tpu.memory_space<vmem>>, vector<1x7x64xf32>,
    %cst_46 = arith.constant 0.000000e+00 : f32
    %37 = vector.broadcast %cst_46 : f32 to vector<1x1x64xf32>
    %c0_47 = arith.constant 0 : index
    %c7 = arith.constant 7 : index
    %c128_48 = arith.constant 128 : index
    %38 = vector.load %arg16[%c0_47, %c7, %c128_48] : memref<1x8x192xf32, #tpu.memory_space<vmem>>, vector<1x1x64xf32>
    tpu.vector_store %arg16[%c0_47, %c7, %c128_48], %37 {strides = array<i32>} : memref<1x8x192xf32, #tpu.memory_space<vmem>>, vector<1x1x64xf32>,
    %c0_49 = arith.constant 0 : index
    %c0_50 = arith.constant 0 : index
    %c0_51 = arith.constant 0 : index
    %39 = vector.load %arg16[%c0_49, %c0_50, %c0_51] : memref<1x8x192xf32, #tpu.memory_space<vmem>>, vector<1x8x192xf32>
    %40 = vector.shape_cast %39 : vector<1x8x192xf32> to vector<8x192xf32>
    %c0_52 = arith.constant 0 : index
    %c0_53 = arith.constant 0 : index
    %41 = vector.load %arg8[%c0_52, %c0_53] : memref<192x128xf32, #tpu.memory_space<vmem>>, vector<192x128xf32>
    %cst_54 = arith.constant dense<0.000000e+00> : vector<8x128xf32>
    %42 = tpu.matmul %40, %41, %cst_54 {dimension_numbers = #tpu.dot_dimension_numbers<[1], [0], [0], [1], [0, 0, 1, 1], [], []>} : vector<8x192xf32>, vector<192x128xf32>, vector<8x128xf32> -> vector<8x128xf32>
    %c0_55 = arith.constant 0 : index
    %c0_56 = arith.constant 0 : index
    %43 = vector.load %arg9[%c0_55, %c0_56] : memref<1x128xf32, #tpu.memory_space<vmem>>, vector<1x128xf32>
    %44 = vector.broadcast %43 : vector<1x128xf32> to vector<8x128xf32>
    %45 = arith.addf %42, %44 : vector<8x128xf32>
    %cst_57 = arith.constant 0.000000e+00 : f32
    %46 = vector.broadcast %cst_57 : f32 to vector<8x128xf32>
    %47 = arith.maximumf %45, %46 : vector<8x128xf32>
    %48 = vector.shape_cast %47 : vector<8x128xf32> to vector<1x1024xf32>
    %c0_58 = arith.constant 0 : index
    %c0_59 = arith.constant 0 : index
    %49 = vector.load %arg10[%c0_58, %c0_59] : memref<1024x32xf32, #tpu.memory_space<vmem>>, vector<1024x32xf32>
    %cst_60 = arith.constant dense<0.000000e+00> : vector<1x32xf32>
    %50 = tpu.matmul %48, %49, %cst_60 {dimension_numbers = #tpu.dot_dimension_numbers<[1], [0], [0], [1], [0, 0, 1, 1], [], []>} : vector<1x1024xf32>, vector<1024x32xf32>, vector<1x32xf32> -> vector<1x32xf32>
    %c0_61 = arith.constant 0 : index
    %c0_62 = arith.constant 0 : index
    %51 = vector.load %arg11[%c0_61, %c0_62] : memref<1x32xf32, #tpu.memory_space<vmem>>, vector<1x32xf32>
    %52 = arith.addf %50, %51 : vector<1x32xf32>
    %cst_63 = arith.constant 0.000000e+00 : f32
    %53 = vector.broadcast %cst_63 : f32 to vector<1x32xf32>
    %54 = arith.maximumf %52, %53 : vector<1x32xf32>
    %c0_64 = arith.constant 0 : index
    %c0_65 = arith.constant 0 : index
    %55 = vector.load %arg12[%c0_64, %c0_65] : memref<32x10xf32, #tpu.memory_space<vmem>>, vector<32x10xf32>
    %cst_66 = arith.constant dense<0.000000e+00> : vector<1x10xf32>
    %56 = tpu.matmul %54, %55, %cst_66 {dimension_numbers = #tpu.dot_dimension_numbers<[1], [0], [0], [1], [0, 0, 1, 1], [], []>} : vector<1x32xf32>, vector<32x10xf32>, vector<1x10xf32> -> vector<1x10xf32>
    %c0_67 = arith.constant 0 : index
    %c0_68 = arith.constant 0 : index
    %57 = vector.load %arg13[%c0_67, %c0_68] : memref<1x10xf32, #tpu.memory_space<vmem>>, vector<1x10xf32>
    %58 = arith.addf %56, %57 : vector<1x10xf32>
    %59 = vector.shape_cast %58 : vector<1x10xf32> to vector<1x1x10xf32>
    %c0_69 = arith.constant 0 : index
    %c0_70 = arith.constant 0 : index
    %c0_71 = arith.constant 0 : index
    %60 = vector.load %arg14[%c0_69, %c0_70, %c0_71] : memref<1x1x10xf32, #tpu.memory_space<vmem>>, vector<1x1x10xf32>
    tpu.vector_store %arg14[%c0_69, %c0_70, %c0_71], %59 {strides = array<i32>} : memref<1x1x10xf32, #tpu.memory_space<vmem>>, vector<1x1x10xf32>,
    return
  }
  func.func @transform_0(%arg0: i32) -> (i32, i32, i32) {
    %c0_i32 = arith.constant 0 : i32
    %c0_i32_0 = arith.constant 0 : i32
    %c0_i32_1 = arith.constant 0 : i32
    return %arg0, %c0_i32, %c0_i32_0 : i32, i32, i32
  }
  func.func @transform_1(%arg0: i32) -> (i32, i32) {
    %c0_i32 = arith.constant 0 : i32
    %c0_i32_0 = arith.constant 0 : i32
    %c0_i32_1 = arith.constant 0 : i32
    return %c0_i32, %c0_i32_0 : i32, i32
  }
  func.func @transform_2(%arg0: i32) -> (i32, i32) {
    %c0_i32 = arith.constant 0 : i32
    %c0_i32_0 = arith.constant 0 : i32
    %c0_i32_1 = arith.constant 0 : i32
    return %c0_i32, %c0_i32_0 : i32, i32
  }
  func.func @transform_3(%arg0: i32) -> (i32, i32) {
    %c0_i32 = arith.constant 0 : i32
    %c0_i32_0 = arith.constant 0 : i32
    %c0_i32_1 = arith.constant 0 : i32
    return %c0_i32, %c0_i32_0 : i32, i32
  }
  func.func @transform_4(%arg0: i32) -> (i32, i32) {
    %c0_i32 = arith.constant 0 : i32
    %c0_i32_0 = arith.constant 0 : i32
    %c0_i32_1 = arith.constant 0 : i32
    return %c0_i32, %c0_i32_0 : i32, i32
  }
  func.func @transform_5(%arg0: i32) -> (i32, i32) {
    %c0_i32 = arith.constant 0 : i32
    %c0_i32_0 = arith.constant 0 : i32
    %c0_i32_1 = arith.constant 0 : i32
    return %c0_i32, %c0_i32_0 : i32, i32
  }
  func.func @transform_6(%arg0: i32) -> (i32, i32) {
    %c0_i32 = arith.constant 0 : i32
    %c0_i32_0 = arith.constant 0 : i32
    %c0_i32_1 = arith.constant 0 : i32
    return %c0_i32, %c0_i32_0 : i32, i32
  }
  func.func @transform_7(%arg0: i32) -> (i32, i32) {
    %c0_i32 = arith.constant 0 : i32
    %c0_i32_0 = arith.constant 0 : i32
    %c0_i32_1 = arith.constant 0 : i32
    return %c0_i32, %c0_i32_0 : i32, i32
  }
  func.func @transform_8(%arg0: i32) -> (i32, i32) {
    %c0_i32 = arith.constant 0 : i32
    %c0_i32_0 = arith.constant 0 : i32
    %c0_i32_1 = arith.constant 0 : i32
    return %c0_i32, %c0_i32_0 : i32, i32
  }
  func.func @transform_9(%arg0: i32) -> (i32, i32) {
    %c0_i32 = arith.constant 0 : i32
    %c0_i32_0 = arith.constant 0 : i32
    %c0_i32_1 = arith.constant 0 : i32
    return %c0_i32, %c0_i32_0 : i32, i32
  }
  func.func @transform_10(%arg0: i32) -> (i32, i32) {
    %c0_i32 = arith.constant 0 : i32
    %c0_i32_0 = arith.constant 0 : i32
    %c0_i32_1 = arith.constant 0 : i32
    return %c0_i32, %c0_i32_0 : i32, i32
  }
  func.func @transform_11(%arg0: i32) -> (i32, i32) {
    %c0_i32 = arith.constant 0 : i32
    %c0_i32_0 = arith.constant 0 : i32
    %c0_i32_1 = arith.constant 0 : i32
    return %c0_i32, %c0_i32_0 : i32, i32
  }
  func.func @transform_12(%arg0: i32) -> (i32, i32) {
    %c0_i32 = arith.constant 0 : i32
    %c0_i32_0 = arith.constant 0 : i32
    %c0_i32_1 = arith.constant 0 : i32
    return %c0_i32, %c0_i32_0 : i32, i32
  }
  func.func @transform_13(%arg0: i32) -> (i32, i32, i32) {
    %c0_i32 = arith.constant 0 : i32
    %c0_i32_0 = arith.constant 0 : i32
    %c0_i32_1 = arith.constant 0 : i32
    return %arg0, %c0_i32, %c0_i32_0 : i32, i32, i32
  }
}

</mosaic_0001>

<bundles_post_ra>
// kernel: _lambda_.1
= control target key start
LH: loop header
LB: loop body
LE: loop exit
PB: predicated region body
PF: predicated region fallthrough
CT: control target
= control target key end

     0   :  { %s2991_s0 = inlined_call_operand.vmem [shape: f32[2,16,48], index: 0, kind: input, shape index: {}]   ;;  %s2992_s1 = inlined_call_operand.vmem [shape: f32[144,128], index: 1, kind: input, shape index: {}]   ;;  %s2993_s2 = inlined_call_operand.vmem [shape: f32[1,128], index: 2, kind: input, shape index: {}]   ;;  %s2994_s3 = inlined_call_operand.vmem [shape: f32[8,16], index: 3, kind: input, shape index: {}]   ;;  %s2995_s4 = inlined_call_operand.vmem [shape: f32[8,16], index: 4, kind: input, shape index: {}]   ;;  %s2996_s5 = inlined_call_operand.vmem [shape: f32[128,64], index: 5, kind: input, shape index: {}]   ;;  %s2997_s6 = inlined_call_operand.vmem [shape: f32[128,64], index: 6, kind: input, shape index: {}]   ;;  %s2998_s7 = inlined_call_operand.vmem [shape: f32[192,128], index: 7, kind: input, shape index: {}]   ;;  %s2999_s8 = inlined_call_operand.vmem [shape: f32[1,128], index: 8, kind: input, shape index: {}]   ;;  %s3000_s9 = inlined_call_operand.vmem [shape: f32[1024,32], index: 9, kind: input, shape index: {}]   ;;  %s3001_s10 = inlined_call_operand.vmem [shape: f32[1,32], index: 10, kind: input, shape index: {}]   ;;  %s3002_s11 = inlined_call_operand.vmem [shape: f32[32,10], index: 11, kind: input, shape index: {}]   ;;  %s3003_s12 = inlined_call_operand.vmem [shape: f32[1,10], index: 12, kind: input, shape index: {}]   ;;  %s3004_s13 = inlined_call_operand.hbm [shape: f32[2,1,10], index: 13, kind: output, shape index: {}]  }
   0x1   :  { %3005 = sst [smem:[#allocation8_spill]] %s2991_s0 }
   0x2   :  { %3006 = sst [smem:[#allocation9_spill]] %s2992_s1 }
   0x3   :  { %18 = vsyncpa [#allocation5], 0 }
   0x4   :  { %20 = vsyncpa [#allocation5 + $0x1], 0  ;;  %s2124_s25 = smov 0   ;;  %s2126_s26 = smov 0  }
   0x5   :  { %s2128_s27 = smov 0   ;;  %s2130_s28 = smov 0  }
   0x6 LB: > { %s2145_s29 = sadd.s32 4294967295, %s2046_s28   ;;  %s1644_s30 = sadd.s32 4294967294, %s2046_s28   ;;  %s2046_s28 = sphi %s2130_s28, %s3016_s28   ;;  %s2042_s27 = sphi %s2128_s27, %s3015_s27   ;;  %s2038_s26 = sphi %s2126_s26, %s3014_s26   ;;  %s2034_s25 = sphi %s2124_s25, %s3013_s25  }
   0x7   : > { %s2149_s14 = sadd.s32 1, %s2046_s28   ;;  %s311_s15 = sadd.s32 1, %s2042_s27 }
   0x8   : > { %s308_s16 = ssub.s32 %s2046_s28, %s2149_s14  ;;  %p321_p0 = scmp.ne.s32.totalorder %s2042_s27, %s2038_s26 }
   0x9   : > { %p309_p1 = scmp.eq.s32.totalorder %s308_s16, 0  ;;  %p322_p2 = scmp.eq.s32.totalorder %s2145_s29, 1 }
   0xa   : > { %p327_p3 = scmp.ne.s32.totalorder %s2038_s26, %s2034_s25  ;;  %p328_p4 = scmp.eq.s32.totalorder %s1644_s30, 1 }
   0xb   : > { %s2160_s17 = scalar_select %p309_p1, %s2042_s27, %s311_s15  }
   0xc   : > { %p2162_p5 = por %p322_p2, %p321_p0  ;;  %p2166_p6 = por %p328_p4, %p327_p3 }
   0xd   : > { %3007 = sst [smem:[#allocation7_spill]] %s2160_s17  ;;  %p1647_p7 = scmp.ge.s32.totalorder %s2046_s28, 1 }
   0xe   : > { %p390_p8 = scmp.lt.s32.totalorder %s2046_s28, 3 }
  0x10   : > { %p391_p9 = pnand %p1647_p7, %p390_p8 }
  0x11   : > { %p433_p10 = scmp.lt.s32.totalorder (!%p391_p9), %s2145_s29, 1  ;;  %s3010_s1 = sld [smem:[#allocation9_spill]] (!%p391_p9) }
  0x12   : > { %394 = sbr.rel (%p391_p9) target bundleno = 1522 (0x5f2), region = 72  ;;  %s3011_s0 = sld [smem:[#allocation8_spill]] (!%p391_p9) }
  0x13   : > { %s2050_s15 = smov (!%p391_p9), 96   ;;  %s2052_s22 = smov (!%p391_p9), 64  }
  0x14   : > { %s431_s20 = sand.u32 (!%p391_p9), 1, %s2038_s26   ;;  %s1658_s23 = sshll.u32 (!%p391_p9), %s2145_s29, 4 }
  0x17   : > { %v504_v0 = vld [vmem:[%s3010_s1 + $0x78] sm:$0xff]  ;;  %v2048_v1 = vmov 0.0   ;;  %v503_v2 = vld [vmem:[%s3010_s1 + $0x70] sm:$0xff]  ;;  %s434_s24 = scalar_select %p433_p10, %s2145_s29, 1  ;;  %v502_v3 = vld [vmem:[%s3010_s1 + $0x68] sm:$0xff]  ;;  %vm483_vm0 = vcmask 122880  }
  0x18   : > { %520 = vmatprep.subr.mxu0 %v2048_v1  ;;  %1854 = vmatprep.subr.mxu1 %v2048_v1  ;;  %vm463_vm1 = vcmask 1046528   ;;  %v501_v6 = vld [vmem:[%s3010_s1 + $0x60] sm:$0xff]  ;;  %vm451_vm2 = vcmask 1040384   ;;  %484 = vst.msk [vmem:[#allocation2 + $0x1f] sm:$0x1] %vm483_vm0, %v2048_v1  ;;  %v500_v12 = vld [vmem:[%s3010_s1 + $0x58] sm:$0xff] }
  0x19   : > { %521 = vmatpush1.msra.mxu0 %v504_v0  ;;  %s1661_s16 = sshll.u32 %s434_s24, 4  ;;  %s2049_s24 = smov 48   ;;  %v499_v14 = vld [vmem:[%s3010_s1 + $0x50] sm:$0xff]  ;;  %v498_v15 = vld [vmem:[%s3010_s1 + $0x48] sm:$0xff]  ;;  %v497_v16 = vld [vmem:[%s3010_s1 + $0x40] sm:$0xff]  ;;  %vm448_vm3 = vcmask 785792  }
  0x1a   : > { %522 = vmatprep.subr.mxu0 %v2048_v1  ;;  %s437_s17 = scalar_lea.vmem %s3011_s0, %s1661_s16  ;;  %v496_v17 = vld [vmem:[%s3010_s1 + $0x38] sm:$0xff]  ;;  %v495_v18 = vld [vmem:[%s3010_s1 + $0x30] sm:$0xff]  ;;  %v494_v19 = vld [vmem:[%s3010_s1 + $0x28] sm:$0xff]  ;;  %vm457_vm4 = vcmask 392193   ;;  %vm461_vm5 = vcmask 385024   ;;  %vm459_vm6 = vcmask 392192  }
  0x1b   : > { %523 = vmatpush1.msra.mxu0 %v503_v2  ;;  %v2190_v4 = vld [vmem:[%s437_s17] sm:$0xff]  ;;  %v439_v5 = vld [vmem:[%s437_s17 + $0x8] sm:$0xff]  ;;  %v492_v21 = vld [vmem:[%s3010_s1 + $0x18] sm:$0xff]  ;;  %vm481_vm7 = vcmask 1041152   ;;  %vm473_vm8 = vcmask 1048320   ;;  %vm475_vm9 = vcmask 130048  }
  0x1c   : > { %524 = vmatprep.subr.mxu0 %v2048_v1  ;;  %442 = vrot.lane.b32.xlu0 %v2190_v4, %s2049_s24  ;;  %v452_v7 = vrot.slane %v2190_v4, 7  ;;  %v464_v8 = vrot.slane %v2190_v4, 1  ;;  %v453_v9 = vrot.slane %v439_v5, 7  ;;  %v465_v10 = vrot.slane %v439_v5, 1  ;;  %v493_v20 = vld [vmem:[%s3010_s1 + $0x20] sm:$0xff]  ;;  %v491_v22 = vld [vmem:[%s3010_s1 + $0x10] sm:$0xff] }
  0x1d   : > { %525 = vmatpush1.msra.mxu0 %v502_v3  ;;  %444 = vrot.lane.b32.xlu1 %v439_v5, %s2049_s24  ;;  %v490_v23 = vld [vmem:[%s3010_s1 + $0x8] sm:$0xff]  ;;  %v489_v24 = vld [vmem:[%s3010_s1] sm:$0xff]  ;;  %vm477_vm10 = vcmask 1047296   ;;  %vm479_vm11 = vcmask 129024   ;;  %vm2051_vm12 = vmmov 0   ;;  %v761_v46 = vld [vmem:[%s2996_s5 + $0x78] sm:$0xff] }
  0x1e   : > { %526 = vmatprep.subr.mxu0 %v2048_v1  ;;  %v466_v11 = vsel %vm463_vm1, %v464_v8, %v465_v10  ;;  %v454_v13 = vsel %vm451_vm2, %v452_v7, %v453_v9  ;;  %v506_v25 = vld [vmem:[%s3010_s1 + $0x88] sm:$0xff]  ;;  %v505_v26 = vld [vmem:[%s3010_s1 + $0x80] sm:$0xff]  ;;  %1858 = vmatprep.mubr.msk.f32.mxu1 %vm2051_vm12, %v2048_v1  ;;  %v847_v47 = vld [vmem:[%s2997_s6 + $0x78] sm:$0xff]  ;;  %vm929_vm13 = vcmask 516096   ;;  %vm933_vm14 = vcmask 522240   ;;  %s432_s0 = scalar_lea.vmem [#allocation4], %s431_s20 }
  0x1f   : > { %527 = vmatpush1.msra.mxu0 %v501_v6  ;;  %v1650_v36 = vld [vmem:[%s2993_s2] ss:$0 sm:$0xff]  ;;  %v760_v48 = vld [vmem:[%s2996_s5 + $0x70] sm:$0xff]  ;;  %v759_v50 = vld [vmem:[%s2996_s5 + $0x68] sm:$0xff]  ;;  %935 = vst.msk [vmem:[#allocation3 + $0xf] sm:$0x1] %vm929_vm13, %v2048_v1 }
  0x20   : > { %528 = vmatprep.subr.mxu0 %v2048_v1  ;;  %467 = vrot.lane.b32.xlu0 %v466_v11, %s2050_s15  ;;  %v597_v44 = vld [vmem:[%s2994_s3] sm:$0xff]  ;;  %v846_v49 = vld [vmem:[%s2997_s6 + $0x70] sm:$0xff]  ;;  %v845_v51 = vld [vmem:[%s2997_s6 + $0x68] sm:$0xff]  ;;  %vm969_vm15 = vcmask 523264   ;;  %vm923_vm0 = vcmask 1048064   ;;  %vm927_vm1 = vcmask 523265  }
  0x21   : > { %469 = vrot.lane.b32.xlu1 %v465_v10, %s2050_s15  ;;  %529 = vmatpush1.msra.mxu0 %v500_v12  ;;  %v671_v45 = vld [vmem:[%s2995_s4] sm:$0xff]  ;;  %v757_v54 = vld [vmem:[%s2996_s5 + $0x58] sm:$0xff]  ;;  %v756_v56 = vld [vmem:[%s2996_s5 + $0x50] sm:$0xff]  ;;  %vm1500_vm2 = vcmask 261120   ;;  %s1589_s24 = sshll.u32 %s432_s0, 4  ;;  %s2956_s15 = scalar_lea.hbm %s3004_s13, %s1658_s23  ;;  %s1590_s24 = int_to_ptr.vmem [resolvable:$true] %s1589_s24 }
  0x22   : > { %530 = vmatprep.subr.mxu0 %v2048_v1  ;;  %v758_v52 = vld [vmem:[%s2996_s5 + $0x60] sm:$0xff]  ;;  %v843_v55 = vld [vmem:[%s2997_s6 + $0x58] sm:$0xff]  ;;  %v842_v57 = vld [vmem:[%s2997_s6 + $0x50] sm:$0xff]  ;;  %s1577_s16 = scalar_lea.sflag [#allocation5], %s431_s20  ;;  %s1986_s1 = scalar_lea.vmem %s1590_s24, 16 }
  0x23   : > { %531 = vmatpush1.msra.mxu0 %v499_v14  ;;  %v844_v53 = vld [vmem:[%s2997_s6 + $0x60] sm:$0xff]  ;;  %v755_v58 = vld [vmem:[%s2996_s5 + $0x48] sm:$0xff]  ;;  %v753_v62 = vld [vmem:[%s2996_s5 + $0x38] sm:$0xff]  ;;  %p1987_p11 = scmp.ne.s32.totalorder %s1590_s24, %s1986_s1  ;;  %s2053_s29 = smov [#allocation4]  }
  0x24   : > { %532 = vmatprep.subr.mxu0 %v2048_v1  ;;  %v841_v59 = vld [vmem:[%s2997_s6 + $0x48] sm:$0xff]  ;;  %v754_v60 = vld [vmem:[%s2996_s5 + $0x40] sm:$0xff]  ;;  %v839_v63 = vld [vmem:[%s2997_s6 + $0x38] sm:$0xff]  ;;  %s1990_s21 = sshll.u32 %s2053_s29, 4  ;;  %s1991_s21 = int_to_ptr.vmem [resolvable:$false] %s1990_s21 }
  0x25   : > { %533 = vmatpush1.msra.mxu0 %v498_v15  ;;  %v840_v61 = vld [vmem:[%s2997_s6 + $0x40] sm:$0xff]  ;;  %v752_v0 = vld [vmem:[%s2996_s5 + $0x30] sm:$0xff]  ;;  %v751_v3 = vld [vmem:[%s2996_s5 + $0x28] sm:$0xff]  ;;  %p1988_p12 = pnand %p1987_p11, %p2162_p5  ;;  %p1993_p0 = scmp.lt.s32.totalorder %s1590_s24, %s1991_s21 }
  0x26   : > { %534 = vmatprep.subr.mxu0 %v2048_v1  ;;  %v838_v2 = vld [vmem:[%s2997_s6 + $0x30] sm:$0xff]  ;;  %v837_v4 = vld [vmem:[%s2997_s6 + $0x28] sm:$0xff]  ;;  %v750_v5 = vld [vmem:[%s2996_s5 + $0x20] sm:$0xff] }
  0x27   : > { %535 = vmatpush1.msra.mxu0 %v497_v16  ;;  %v836_v6 = vld [vmem:[%s2997_s6 + $0x20] sm:$0xff]  ;;  %v835_v8 = vld [vmem:[%s2997_s6 + $0x18] sm:$0xff]  ;;  %v748_v9 = vld [vmem:[%s2996_s5 + $0x10] sm:$0xff]  ;;  %p1989_p13 = pneg %p1988_p12 }
  0x28   : > { %536 = vmatprep.subr.mxu0 %v2048_v1  ;;  %v834_v10 = vld [vmem:[%s2997_s6 + $0x10] sm:$0xff]  ;;  %v747_v11 = vld [vmem:[%s2996_s5 + $0x8] sm:$0xff]  ;;  %v832_v14 = vld [vmem:[%s2997_s6] sm:$0xff] }
  0x29   : > { %537 = vmatpush1.msra.mxu0 %v496_v17  ;;  %v833_v12 = vld [vmem:[%s2997_s6 + $0x8] sm:$0xff] }
  0x2a   : > { %538 = vmatprep.subr.mxu0 %v2048_v1 }
  0x2b   : > { %539 = vmatpush1.msra.mxu0 %v495_v18 }
  0x2c   : > { %540 = vmatprep.subr.mxu0 %v2048_v1 }
  0x2d   : > { %541 = vmatpush1.msra.mxu0 %v494_v19 }
  0x2e   : > { %542 = vmatprep.subr.mxu0 %v2048_v1 }
  0x2f   : > { %543 = vmatpush1.msra.mxu0 %v493_v20  ;;  %v953_v20 = vld [vmem:[%s2998_s7 + $0x78] sm:$0xff] }
  0x30   : > { %544 = vmatprep.subr.mxu0 %v2048_v1 }
  0x31   : > { %545 = vmatpush1.msra.mxu0 %v492_v21  ;;  %v952_v21 = vld [vmem:[%s2998_s7 + $0x70] sm:$0xff] }
  0x32   : > { %546 = vmatprep.subr.mxu0 %v2048_v1 }
  0x33   : > { %547 = vmatpush1.msra.mxu0 %v491_v22  ;;  %v951_v22 = vld [vmem:[%s2998_s7 + $0x68] sm:$0xff] }
  0x34   : > { %548 = vmatprep.subr.mxu0 %v2048_v1 }
  0x35   : > { %549 = vmatpush1.msra.mxu0 %v490_v23  ;;  %v950_v23 = vld [vmem:[%s2998_s7 + $0x60] sm:$0xff] }
  0x36   : > { %550 = vmatprep.subr.mxu0 %v2048_v1 }
  0x37   : > { %551 = vmatpush1.msra.mxu0 %v489_v24  ;;  %v949_v24 = vld [vmem:[%s2998_s7 + $0x58] sm:$0xff] }
  0x38   : > { %580 = vmatprep.subr.mxu0 %v2048_v1 }
  0x39   : > { %581 = vmatpush2.msra.mxu0 %v506_v25  ;;  %v948_v25 = vld [vmem:[%s2998_s7 + $0x50] sm:$0xff] }
  0x3a   : > { %582 = vmatprep.subr.mxu0 %v2048_v1 }
  0x3b   : > { %583 = vmatpush2.msra.mxu0 %v505_v26  ;;  %v947_v26 = vld [vmem:[%s2998_s7 + $0x48] sm:$0xff] }
  0x3c   : > { %1847 = vmatprep.subr.mxu0 %v2048_v1 }
  0x8e   : > { %v443_v27 = vpop.permute.xlu0 %442 }
  0x8f   : > { %v445_v28 = vpop.permute.xlu1 %444  ;;  %449 = vst.msk [vmem:[#allocation2] sm:$0xff] %vm448_vm3, %v443_v27  ;;  %v946_v27 = vld [vmem:[%s2998_s7 + $0x40] sm:$0xff] }
  0x90   : > { %450 = vst.msk [vmem:[#allocation2 + $0x10] sm:$0xff] %vm448_vm3, %v445_v28  ;;  %v945_v28 = vld [vmem:[%s2998_s7 + $0x38] sm:$0xff]  ;;  %vm1574_vm3 = vcmask 73728  }
  0x91   : > { %458 = vst.msk [vmem:[#allocation2] sm:$0xfe] %vm457_vm4, %v452_v7  ;;  %v749_v7 = vld [vmem:[%s2996_s5 + $0x18] sm:$0xff] }
  0x92   : > { %462 = vst.msk [vmem:[#allocation2] sm:$0x1] %vm461_vm5, %v2048_v1  ;;  %v468_v29 = vpop.permute.xlu0 %467 }
  0x93   : > { %460 = vst.msk [vmem:[#allocation2 + $0x10] sm:$0xff] %vm459_vm6, %v454_v13  ;;  %v470_v30 = vpop.permute.xlu1 %469  ;;  %v746_v13 = vld [vmem:[%s2996_s5] sm:$0xff] }
  0x94   : > { %482 = vst.msk [vmem:[#allocation2 + $0x17] sm:$0x1] %vm481_vm7, %v2048_v1 }
  0x95   : > { %474 = vst.msk [vmem:[#allocation2] sm:$0xff] %vm473_vm8, %v468_v29 }
  0x96   : > { %476 = vst.msk [vmem:[#allocation2 + $0x8] sm:$0xff] %vm475_vm9, %v468_v29  ;;  %v944_v29 = vld [vmem:[%s2998_s7 + $0x30] sm:$0xff] }
  0x97   : > { %478 = vst.msk [vmem:[#allocation2 + $0x10] sm:$0x7f] %vm477_vm10, %v470_v30 }
  0x98   : > { %480 = vst.msk [vmem:[#allocation2 + $0x18] sm:$0x7f] %vm479_vm11, %v470_v30  ;;  %v943_v30 = vld [vmem:[%s2998_s7 + $0x28] sm:$0xff] }
  0x9c   : > { %v485_v32 = vld [vmem:[#allocation2] sm:$0xff] }
  0x9d   : > { %v486_v31 = vld [vmem:[#allocation2 + $0x8] sm:$0xff] }
  0x9e   : > { %1651 = vmatprep.mubr.msk.f32.mxu0 %vm475_vm9, %v486_v31  ;;  %v487_v34 = vld [vmem:[#allocation2 + $0x10] sm:$0xff]  ;;  %v942_v31 = vld [vmem:[%s2998_s7 + $0x20] sm:$0xff] }
  0x9f   : > { %v488_v33 = vld [vmem:[#allocation2 + $0x18] sm:$0xff]  ;;  %585 = vmatmul.mubr.f32.vlgmr.msra.gmra.mxu0 %v485_v32 }
  0xa0   : > { %1652 = vmatprep.mubr.msk.f32.mxu0 %vm475_vm9, %v488_v33  ;;  %v941_v32 = vld [vmem:[%s2998_s7 + $0x18] sm:$0xff]  ;;  %v940_v33 = vld [vmem:[%s2998_s7 + $0x10] sm:$0xff] }
  0xa3   : > { %590 = vmatmul.mubr.f32.gmra.mxu0 %v487_v34  ;;  %v939_v34 = vld [vmem:[%s2998_s7 + $0x8] sm:$0xff] }
  0xa4   : > { %1851 = vmatprep.mubr.msk.f32.mxu0 %vm2051_vm12, %v2048_v1 }
 0x15f   : > { %v586_v35 = vpop.f32.mrf.mxu0 }
 0x160   : > { %v587_v39 = vadd.f32 %v1650_v36, %v586_v35  ;;  %v938_v35 = vld [vmem:[%s2998_s7] sm:$0xff] }
 0x161   : > { %v588_v37 = vpop.f32.mrf.mxu0 }
 0x162   : > { %v595_v43 = vmax.f32 %v587_v39, 0.0  ;;  %v960_v37 = vld [vmem:[%s2998_s7 + $0xb0] sm:$0xff]  ;;  %v958_v39 = vld [vmem:[%s2998_s7 + $0xa0] sm:$0xff] }
 0x163   : > { %v591_v38 = vpop.f32.mrf.mxu0 }
 0x164   : > { %v592_v40 = vadd.f32 %v1650_v36, %v591_v38  ;;  %v961_v36 = vld [vmem:[%s2998_s7 + $0xb8] sm:$0xff]  ;;  %v959_v38 = vld [vmem:[%s2998_s7 + $0xa8] sm:$0xff] }
 0x165   : > { %v593_v41 = vpop.f32.mrf.mxu0 }
 0x166   : > { %v596_v42 = vmax.f32 %v592_v40, 0.0  ;;  %v957_v40 = vld [vmem:[%s2998_s7 + $0x98] sm:$0xff]  ;;  %v956_v41 = vld [vmem:[%s2998_s7 + $0x90] sm:$0xff] }
 0x168   : > { %1848 = vmatpush3.msra.mxu0 %v596_v42  ;;  %1855 = vmatpush3.msra.mxu1 %v596_v42  ;;  %v955_v42 = vld [vmem:[%s2998_s7 + $0x88] sm:$0xff] }
 0x169   : > { %1849 = vmatprep.subr.mxu0 %v2048_v1  ;;  %1856 = vmatprep.subr.mxu1 %v2048_v1 }
 0x16a   : > { %1850 = vmatpush3.msra.mxu0 %v595_v43  ;;  %1857 = vmatpush3.msra.mxu1 %v595_v43  ;;  %v954_v43 = vld [vmem:[%s2998_s7 + $0x80] sm:$0xff] }
 0x16b   : > { %1852 = vmatmul.mubr.msk.f32.vlgmr.msra.gmra.mxu0 %vm475_vm9, %v597_v44  ;;  %1859 = vmatmul.mubr.msk.f32.vlgmr.msra.gmra.mxu1 %vm475_vm9, %v671_v45  ;;  %v1075_v44 = vld [vmem:[%s3000_s9 + $0xf8] sm:$0xff] }
 0x16c   : > { %1861 = vmatprep.subr.mxu1 %v2048_v1  ;;  %1896 = vmatprep.subr.mxu0 %v2048_v1  ;;  %v1107_v45 = vld [vmem:[%s3000_s9 + $0x1f8] sm:$0xff] }
 0x16d   : > { %1862 = vmatpush3.msra.mxu1 %v761_v46  ;;  %1897 = vmatpush3.msra.mxu0 %v847_v47  ;;  %v1059_v46 = vld [vmem:[%s3000_s9 + $0x78] sm:$0xff] }
 0x16e   : > { %1863 = vmatprep.subr.mxu1 %v2048_v1  ;;  %1898 = vmatprep.subr.mxu0 %v2048_v1 }
 0x16f   : > { %1864 = vmatpush3.msra.mxu1 %v760_v48  ;;  %1899 = vmatpush3.msra.mxu0 %v846_v49  ;;  %v1074_v49 = vld [vmem:[%s3000_s9 + $0xf0] sm:$0xff] }
 0x170   : > { %1865 = vmatprep.subr.mxu1 %v2048_v1  ;;  %1900 = vmatprep.subr.mxu0 %v2048_v1 }
 0x171   : > { %1866 = vmatpush3.msra.mxu1 %v759_v50  ;;  %1901 = vmatpush3.msra.mxu0 %v845_v51  ;;  %v1058_v51 = vld [vmem:[%s3000_s9 + $0x70] sm:$0xff] }
 0x172   : > { %1867 = vmatprep.subr.mxu1 %v2048_v1  ;;  %1902 = vmatprep.subr.mxu0 %v2048_v1 }
 0x173   : > { %1868 = vmatpush3.msra.mxu1 %v758_v52  ;;  %1903 = vmatpush3.msra.mxu0 %v844_v53 }
 0x174   : > { %1869 = vmatprep.subr.mxu1 %v2048_v1  ;;  %1904 = vmatprep.subr.mxu0 %v2048_v1 }
 0x175   : > { %1870 = vmatpush3.msra.mxu1 %v757_v54  ;;  %1905 = vmatpush3.msra.mxu0 %v843_v55  ;;  %v1073_v54 = vld [vmem:[%s3000_s9 + $0xe8] sm:$0xff] }
 0x176   : > { %1871 = vmatprep.subr.mxu1 %v2048_v1  ;;  %1906 = vmatprep.subr.mxu0 %v2048_v1 }
 0x177   : > { %1872 = vmatpush3.msra.mxu1 %v756_v56  ;;  %1907 = vmatpush3.msra.mxu0 %v842_v57  ;;  %v1057_v56 = vld [vmem:[%s3000_s9 + $0x68] sm:$0xff]  ;;  %v1072_v57 = vld [vmem:[%s3000_s9 + $0xe0] sm:$0xff] }
 0x178   : > { %1873 = vmatprep.subr.mxu1 %v2048_v1  ;;  %1908 = vmatprep.subr.mxu0 %v2048_v1 }
 0x179   : > { %1874 = vmatpush3.msra.mxu1 %v755_v58  ;;  %1909 = vmatpush3.msra.mxu0 %v841_v59  ;;  %v1056_v58 = vld [vmem:[%s3000_s9 + $0x60] sm:$0xff]  ;;  %v1071_v59 = vld [vmem:[%s3000_s9 + $0xd8] sm:$0xff] }
 0x17a   : > { %1875 = vmatprep.subr.mxu1 %v2048_v1  ;;  %1910 = vmatprep.subr.mxu0 %v2048_v1 }
 0x17b   : > { %1876 = vmatpush3.msra.mxu1 %v754_v60  ;;  %1911 = vmatpush3.msra.mxu0 %v840_v61  ;;  %v1055_v60 = vld [vmem:[%s3000_s9 + $0x58] sm:$0xff]  ;;  %v1070_v61 = vld [vmem:[%s3000_s9 + $0xd0] sm:$0xff] }
 0x17c   : > { %1877 = vmatprep.subr.mxu1 %v2048_v1  ;;  %1912 = vmatprep.subr.mxu0 %v2048_v1 }
 0x17d   : > { %1878 = vmatpush3.msra.mxu1 %v753_v62  ;;  %1913 = vmatpush3.msra.mxu0 %v839_v63  ;;  %v1054_v62 = vld [vmem:[%s3000_s9 + $0x50] sm:$0xff]  ;;  %v1069_v63 = vld [vmem:[%s3000_s9 + $0xc8] sm:$0xff] }
 0x17e   : > { %1879 = vmatprep.subr.mxu1 %v2048_v1  ;;  %1914 = vmatprep.subr.mxu0 %v2048_v1 }
 0x17f   : > { %1880 = vmatpush3.msra.mxu1 %v752_v0  ;;  %1915 = vmatpush3.msra.mxu0 %v838_v2  ;;  %v1053_v0 = vld [vmem:[%s3000_s9 + $0x48] sm:$0xff] }
 0x180   : > { %1881 = vmatprep.subr.mxu1 %v2048_v1  ;;  %1916 = vmatprep.subr.mxu0 %v2048_v1 }
 0x181   : > { %1882 = vmatpush3.msra.mxu1 %v751_v3  ;;  %1917 = vmatpush3.msra.mxu0 %v837_v4  ;;  %v1068_v3 = vld [vmem:[%s3000_s9 + $0xc0] sm:$0xff] }
 0x182   : > { %1883 = vmatprep.subr.mxu1 %v2048_v1  ;;  %1918 = vmatprep.subr.mxu0 %v2048_v1  ;;  %v1052_v4 = vld [vmem:[%s3000_s9 + $0x40] sm:$0xff] }
 0x183   : > { %1884 = vmatpush3.msra.mxu1 %v750_v5  ;;  %1919 = vmatpush3.msra.mxu0 %v836_v6  ;;  %v1067_v5 = vld [vmem:[%s3000_s9 + $0xb8] sm:$0xff] }
 0x184   : > { %1885 = vmatprep.subr.mxu1 %v2048_v1  ;;  %1920 = vmatprep.subr.mxu0 %v2048_v1  ;;  %v1051_v6 = vld [vmem:[%s3000_s9 + $0x38] sm:$0xff] }
 0x185   : > { %1886 = vmatpush3.msra.mxu1 %v749_v7  ;;  %1921 = vmatpush3.msra.mxu0 %v835_v8  ;;  %v1066_v7 = vld [vmem:[%s3000_s9 + $0xb0] sm:$0xff] }
 0x186   : > { %1887 = vmatprep.subr.mxu1 %v2048_v1  ;;  %1922 = vmatprep.subr.mxu0 %v2048_v1  ;;  %v1050_v8 = vld [vmem:[%s3000_s9 + $0x30] sm:$0xff] }
 0x187   : > { %1888 = vmatpush3.msra.mxu1 %v748_v9  ;;  %1923 = vmatpush3.msra.mxu0 %v834_v10  ;;  %v1065_v9 = vld [vmem:[%s3000_s9 + $0xa8] sm:$0xff] }
 0x188   : > { %1889 = vmatprep.subr.mxu1 %v2048_v1  ;;  %1924 = vmatprep.subr.mxu0 %v2048_v1  ;;  %v1049_v10 = vld [vmem:[%s3000_s9 + $0x28] sm:$0xff] }
 0x189   : > { %1893 = vmatprep.mubr.msk.f32.mxu1 %vm2051_vm12, %v2048_v1  ;;  %1928 = vmatprep.mubr.msk.f32.mxu0 %vm2051_vm12, %v2048_v1 }
 0x18a   : > { %1890 = vmatpush3.msra.mxu1 %v747_v11  ;;  %1925 = vmatpush3.msra.mxu0 %v833_v12  ;;  %v1064_v11 = vld [vmem:[%s3000_s9 + $0xa0] sm:$0xff] }
 0x18b   : > { %1891 = vmatprep.subr.mxu1 %v2048_v1  ;;  %1926 = vmatprep.subr.mxu0 %v2048_v1  ;;  %v1048_v12 = vld [vmem:[%s3000_s9 + $0x20] sm:$0xff] }
 0x18c   : > { %1892 = vmatpush3.msra.mxu1 %v746_v13  ;;  %1927 = vmatpush3.msra.mxu0 %v832_v14  ;;  %v1063_v13 = vld [vmem:[%s3000_s9 + $0x98] sm:$0xff] }
 0x18d   : > { %973 = vmatprep.subr.mxu1 %v2048_v1  ;;  %1702 = vmatprep.subr.mxu0 %v1075_v44  ;;  %v1094_v44 = vld [vmem:[%s3000_s9 + $0x190] sm:$0xff] }
 0x22b   : > { %v667_v15 = vpop.f32.mrf.mxu0  ;;  %v741_v16 = vpop.f32.mrf.mxu1 }
 0x22c   : > { %v745_v17 = vmax.f32 %v667_v15, %v741_v16  ;;  %v1091_v16 = vld [vmem:[%s3000_s9 + $0x178] sm:$0xff] }
 0x22d   : > { %v1853_v18 = vpop.f32.mrf.mxu0  ;;  %v1860_v19 = vpop.f32.mrf.mxu1 }
 0x22e   : > { %1894 = vmatmul.mubr.f32.vlgmr.msra.gmra.mxu1 %v745_v17  ;;  %1929 = vmatmul.mubr.f32.vlgmr.msra.gmra.mxu0 %v745_v17  ;;  %v1106_v18 = vld [vmem:[%s3000_s9 + $0x1f0] sm:$0xff] }
 0x22f   : > { %974 = vmatpush1.msra.mxu1 %v953_v20  ;;  %1703 = vmatpush3.msra.mxu0 %v1059_v46  ;;  %v1090_v19 = vld [vmem:[%s3000_s9 + $0x170] sm:$0xff]  ;;  %v1105_v20 = vld [vmem:[%s3000_s9 + $0x1e8] sm:$0xff] }
 0x230   : > { %975 = vmatprep.subr.mxu1 %v2048_v1  ;;  %1704 = vmatprep.subr.mxu0 %v1074_v49  ;;  %v1078_v46 = vld [vmem:[%s3000_s9 + $0x110] sm:$0xff]  ;;  %v1045_v49 = vld [vmem:[%s3000_s9 + $0x8] sm:$0xff] }
 0x231   : > { %976 = vmatpush1.msra.mxu1 %v952_v21  ;;  %1705 = vmatpush3.msra.mxu0 %v1058_v51  ;;  %v1089_v21 = vld [vmem:[%s3000_s9 + $0x168] sm:$0xff]  ;;  %v1060_v51 = vld [vmem:[%s3000_s9 + $0x80] sm:$0xff] }
 0x232   : > { %977 = vmatprep.subr.mxu1 %v2048_v1  ;;  %1706 = vmatprep.subr.mxu0 %v1073_v54  ;;  %v1076_v54 = vld [vmem:[%s3000_s9 + $0x100] sm:$0xff] }
 0x233   : > { %978 = vmatpush1.msra.mxu1 %v951_v22  ;;  %1707 = vmatpush3.msra.mxu0 %v1057_v56  ;;  %v1104_v22 = vld [vmem:[%s3000_s9 + $0x1e0] sm:$0xff]  ;;  %v1171_v56 = vld [vmem:[%s3000_s9 + $0x3f8] sm:$0xff] }
 0x234   : > { %979 = vmatprep.subr.mxu1 %v2048_v1  ;;  %1708 = vmatprep.subr.mxu0 %v1072_v57  ;;  %v1174_v57 = vlaneseq }
 0x235   : > { %980 = vmatpush1.msra.mxu1 %v950_v23  ;;  %1709 = vmatpush3.msra.mxu0 %v1056_v58  ;;  %v1088_v23 = vld [vmem:[%s3000_s9 + $0x160] sm:$0xff] }
 0x236   : > { %981 = vmatprep.subr.mxu1 %v2048_v1  ;;  %1710 = vmatprep.subr.mxu0 %v1071_v59  ;;  %v2718_v58 = vshrl.u32 %v1174_v57, 7  ;;  %v1655_v59 = vld [vmem:[%s2999_s8] ss:$0 sm:$0xff] }
 0x237   : > { %982 = vmatpush1.msra.mxu1 %v949_v24  ;;  %1711 = vmatpush3.msra.mxu0 %v1055_v60  ;;  %v1103_v24 = vld [vmem:[%s3000_s9 + $0x1d8] sm:$0xff]  ;;  %v1112_v57 = vld [vmem:[%s3000_s9 + $0x220] sm:$0xff] }
 0x238   : > { %983 = vmatprep.subr.mxu1 %v2048_v1  ;;  %1712 = vmatprep.subr.mxu0 %v1070_v61  ;;  %v1180_v61 = vsub.s32 1, %v2718_v58 }
 0x239   : > { %984 = vmatpush1.msra.mxu1 %v948_v25  ;;  %1713 = vmatpush3.msra.mxu0 %v1054_v62  ;;  %v1087_v25 = vld [vmem:[%s3000_s9 + $0x158] sm:$0xff] }
 0x23a   : > { %985 = vmatprep.subr.mxu1 %v2048_v1  ;;  %1714 = vmatprep.subr.mxu0 %v1069_v63  ;;  %v1188_v63 = vsub.s32 3, %v2718_v58 }
 0x23b   : > { %986 = vmatpush1.msra.mxu1 %v947_v26  ;;  %1715 = vmatpush3.msra.mxu0 %v1053_v0  ;;  %v1102_v26 = vld [vmem:[%s3000_s9 + $0x1d0] sm:$0xff]  ;;  %v1176_v0 = vsub.s32 0, %v2718_v58 }
 0x23c   : > { %987 = vmatprep.subr.mxu1 %v2048_v1  ;;  %1716 = vmatprep.subr.mxu0 %v1068_v3 }
 0x23d   : > { %988 = vmatpush1.msra.mxu1 %v946_v27  ;;  %1717 = vmatpush3.msra.mxu0 %v1052_v4  ;;  %v1086_v27 = vld [vmem:[%s3000_s9 + $0x150] sm:$0xff] }
 0x23e   : > { %989 = vmatprep.subr.mxu1 %v2048_v1  ;;  %1718 = vmatprep.subr.mxu0 %v1067_v5  ;;  %v1196_v5 = vsub.s32 5, %v2718_v58 }
 0x23f   : > { %990 = vmatpush1.msra.mxu1 %v945_v28  ;;  %1719 = vmatpush3.msra.mxu0 %v1051_v6  ;;  %v1101_v28 = vld [vmem:[%s3000_s9 + $0x1c8] sm:$0xff]  ;;  %v1204_v6 = vsub.s32 7, %v2718_v58 }
 0x240   : > { %991 = vmatprep.subr.mxu1 %v2048_v1  ;;  %1720 = vmatprep.subr.mxu0 %v1066_v7 }
 0x241   : > { %992 = vmatpush1.msra.mxu1 %v944_v29  ;;  %1721 = vmatpush3.msra.mxu0 %v1050_v8  ;;  %v1085_v29 = vld [vmem:[%s3000_s9 + $0x148] sm:$0xff] }
 0x242   : > { %993 = vmatprep.subr.mxu1 %v2048_v1  ;;  %1722 = vmatprep.subr.mxu0 %v1065_v9 }
 0x243   : > { %994 = vmatpush1.msra.mxu1 %v943_v30  ;;  %1723 = vmatpush3.msra.mxu0 %v1049_v10  ;;  %v1100_v30 = vld [vmem:[%s3000_s9 + $0x1c0] sm:$0xff] }
 0x244   : > { %995 = vmatprep.subr.mxu1 %v2048_v1  ;;  %1724 = vmatprep.subr.mxu0 %v1064_v11  ;;  %v1123_v11 = vld [vmem:[%s3000_s9 + $0x278] sm:$0xff] }
 0x245   : > { %996 = vmatpush1.msra.mxu1 %v942_v31  ;;  %1725 = vmatpush3.msra.mxu0 %v1048_v12  ;;  %v1084_v31 = vld [vmem:[%s3000_s9 + $0x140] sm:$0xff]  ;;  %v1155_v12 = vld [vmem:[%s3000_s9 + $0x378] sm:$0xff] }
 0x246   : > { %997 = vmatprep.subr.mxu1 %v2048_v1  ;;  %1726 = vmatprep.subr.mxu0 %v1063_v13  ;;  %v1138_v13 = vld [vmem:[%s3000_s9 + $0x2f0] sm:$0xff] }
 0x247   : > { %998 = vmatpush1.msra.mxu1 %v941_v32  ;;  %v1099_v32 = vld [vmem:[%s3000_s9 + $0x1b8] sm:$0xff] }
 0x248   : > { %999 = vmatprep.subr.mxu1 %v2048_v1 }
 0x249   : > { %1000 = vmatpush1.msra.mxu1 %v940_v33  ;;  %v1083_v33 = vld [vmem:[%s3000_s9 + $0x138] sm:$0xff] }
 0x24a   : > { %1001 = vmatprep.subr.mxu1 %v2048_v1 }
 0x24b   : > { %1002 = vmatpush1.msra.mxu1 %v939_v34  ;;  %v1098_v34 = vld [vmem:[%s3000_s9 + $0x1b0] sm:$0xff] }
 0x24c   : > { %1003 = vmatprep.subr.mxu1 %v2048_v1 }
 0x24d   : > { %1004 = vmatpush1.msra.mxu1 %v938_v35  ;;  %v1082_v35 = vld [vmem:[%s3000_s9 + $0x130] sm:$0xff] }
 0x24e   : > { %1021 = vmatprep.subr.mxu1 %v2048_v1 }
 0x24f   : > { %1022 = vmatpush2.msra.mxu1 %v961_v36  ;;  %v1097_v36 = vld [vmem:[%s3000_s9 + $0x1a8] sm:$0xff] }
 0x250   : > { %1023 = vmatprep.subr.mxu1 %v2048_v1 }
 0x251   : > { %1024 = vmatpush2.msra.mxu1 %v960_v37  ;;  %v1081_v37 = vld [vmem:[%s3000_s9 + $0x128] sm:$0xff] }
 0x252   : > { %1025 = vmatprep.subr.mxu1 %v2048_v1 }
 0x253   : > { %1026 = vmatpush2.msra.mxu1 %v959_v38  ;;  %v1096_v38 = vld [vmem:[%s3000_s9 + $0x1a0] sm:$0xff] }
 0x254   : > { %1027 = vmatprep.subr.mxu1 %v2048_v1 }
 0x255   : > { %1028 = vmatpush2.msra.mxu1 %v958_v39  ;;  %v1080_v39 = vld [vmem:[%s3000_s9 + $0x120] sm:$0xff] }
 0x256   : > { %1029 = vmatprep.subr.mxu1 %v2048_v1 }
 0x257   : > { %1030 = vmatpush2.msra.mxu1 %v957_v40  ;;  %v1095_v40 = vld [vmem:[%s3000_s9 + $0x198] sm:$0xff] }
 0x258   : > { %1031 = vmatprep.subr.mxu1 %v2048_v1 }
 0x259   : > { %1032 = vmatpush2.msra.mxu1 %v956_v41  ;;  %v1047_v41 = vld [vmem:[%s3000_s9 + $0x18] sm:$0xff] }
 0x25a   : > { %1033 = vmatprep.subr.mxu1 %v2048_v1  ;;  %1727 = vmatpush3.msra.mxu0 %v1047_v41  ;;  %v1116_v41 = vld [vmem:[%s3000_s9 + $0x240] sm:$0xff] }
 0x25b   : > { %1034 = vmatpush2.msra.mxu1 %v955_v42  ;;  %v1079_v42 = vld [vmem:[%s3000_s9 + $0x118] sm:$0xff] }
 0x25c   : > { %1035 = vmatprep.subr.mxu1 %v2048_v1 }
 0x25d   : > { %1036 = vmatpush2.msra.mxu1 %v954_v43  ;;  %v1062_v43 = vld [vmem:[%s3000_s9 + $0x90] sm:$0xff] }
 0x25e   : > { %1737 = vmatprep.subr.mxu1 %v1107_v45  ;;  %1728 = vmatprep.subr.mxu0 %v1062_v43  ;;  %v1046_v45 = vld [vmem:[%s3000_s9 + $0x10] sm:$0xff]  ;;  %v1131_v43 = vld [vmem:[%s3000_s9 + $0x2b8] sm:$0xff] }
 0x25f   : > { %1729 = vmatpush3.msra.mxu0 %v1046_v45  ;;  %v1115_v45 = vld [vmem:[%s3000_s9 + $0x238] sm:$0xff] }
 0x2ee   : > { %v828_v47 = vpop.f32.mrf.mxu1  ;;  %v914_v48 = vpop.f32.mrf.mxu0 }
 0x2ef   : > { %v2525_v50 = vmax.f32 %v828_v47, %v914_v48  ;;  %v1061_v47 = vld [vmem:[%s3000_s9 + $0x88] sm:$0xff] }
 0x2f0   : > { %v1895_v52 = vpop.f32.mrf.mxu1  ;;  %v1930_v53 = vpop.f32.mrf.mxu0  ;;  %v1093_v48 = vld [vmem:[%s3000_s9 + $0x188] sm:$0xff]  ;;  %1730 = vmatprep.subr.mxu0 %v1061_v47  ;;  %v1130_v47 = vld [vmem:[%s3000_s9 + $0x2b0] sm:$0xff] }
 0x2f1   : > { %v931_v55 = vrot.slane %v2525_v50, 1  ;;  %920 = vrot.lane.b32.xlu0 %v2525_v50, %s2052_s22  ;;  %v925_v14 = vrot.slane %v2525_v50, 7  ;;  %v1077_v50 = vld [vmem:[%s3000_s9 + $0x108] sm:$0xff]  ;;  %1731 = vmatpush3.msra.mxu0 %v1045_v49  ;;  %v1092_v52 = vld [vmem:[%s3000_s9 + $0x180] sm:$0xff]  ;;  %v1114_v49 = vld [vmem:[%s3000_s9 + $0x230] sm:$0xff]  ;;  %s1992_s22 = scalar_lea.vmem %s1991_s21, 32 }
 0x2f2   : > { %v1044_v53 = vld [vmem:[%s3000_s9] sm:$0xff]  ;;  %1732 = vmatprep.subr.mxu0 %v1060_v51  ;;  %v1129_v51 = vld [vmem:[%s3000_s9 + $0x2a8] sm:$0xff]  ;;  %p1994_p1 = scmp.lt.s32.totalorder %s1992_s22, %s1986_s1 }
 0x2f3   : > { %934 = vst.msk [vmem:[#allocation3 + $0x8] sm:$0x7f] %vm933_vm14, %v931_v55  ;;  %1733 = vmatpush3.msra.mxu0 %v1044_v53  ;;  %v1139_v55 = vld [vmem:[%s3000_s9 + $0x2f8] sm:$0xff]  ;;  %v1113_v53 = vld [vmem:[%s3000_s9 + $0x228] sm:$0xff] }
 0x2f4   : > { %1772 = vmatprep.subr.mxu0 %v1139_v55  ;;  %v1128_v55 = vld [vmem:[%s3000_s9 + $0x2a0] sm:$0xff]  ;;  %p1995_p2 = por %p1994_p1, %p1993_p0 }
 0x2f6   : > { %p1996_p3 = pnand %p1995_p2, %p1989_p13 }
 0x2fa   : > { %v937_v2 = vld [vmem:[#allocation3 + $0x8] sm:$0xff] }
 0x2fb   : > { %1656 = vmatprep.mubr.msk.f32.mxu1 %vm969_vm15, %v937_v2  ;;  %v1184_v2 = vsub.s32 2, %v2718_v58 }
 0x363   : > { %v921_v15 = vpop.permute.xlu0 %920 }
 0x364   : > { %924 = vst.msk [vmem:[#allocation3] sm:$0xff] %vm923_vm0, %v921_v15  ;;  %v1170_v15 = vld [vmem:[%s3000_s9 + $0x3f0] sm:$0xff] }
 0x365   : > { %928 = vst.msk [vmem:[#allocation3] sm:$0xfe] %vm927_vm1, %v925_v14 }
 0x366   : > { %930 = vst.msk [vmem:[#allocation3] sm:$0x1] %vm929_vm13, %v2048_v1 }
 0x36d   : > { %v936_v17 = vld [vmem:[#allocation3] sm:$0xff] }
 0x36e   : > { %1038 = vmatmul.mubr.f32.vlgmr.msra.gmra.mxu1 %v936_v17  ;;  %v1122_v17 = vld [vmem:[%s3000_s9 + $0x270] sm:$0xff] }
 0x36f   : > { %1738 = vmatpush3.msra.mxu1 %v1091_v16 }
 0x370   : > { %1739 = vmatprep.subr.mxu1 %v1106_v18  ;;  %v1154_v18 = vld [vmem:[%s3000_s9 + $0x370] sm:$0xff] }
 0x371   : > { %1740 = vmatpush3.msra.mxu1 %v1090_v19  ;;  %v1137_v19 = vld [vmem:[%s3000_s9 + $0x2e8] sm:$0xff] }
 0x372   : > { %1741 = vmatprep.subr.mxu1 %v1105_v20  ;;  %v1169_v20 = vld [vmem:[%s3000_s9 + $0x3e8] sm:$0xff] }
 0x373   : > { %1742 = vmatpush3.msra.mxu1 %v1089_v21  ;;  %v1121_v21 = vld [vmem:[%s3000_s9 + $0x268] sm:$0xff] }
 0x374   : > { %1743 = vmatprep.subr.mxu1 %v1104_v22  ;;  %v1153_v22 = vld [vmem:[%s3000_s9 + $0x368] sm:$0xff] }
 0x375   : > { %1744 = vmatpush3.msra.mxu1 %v1088_v23  ;;  %v1136_v23 = vld [vmem:[%s3000_s9 + $0x2e0] sm:$0xff] }
 0x376   : > { %1745 = vmatprep.subr.mxu1 %v1103_v24  ;;  %v1168_v24 = vld [vmem:[%s3000_s9 + $0x3e0] sm:$0xff] }
 0x377   : > { %1746 = vmatpush3.msra.mxu1 %v1087_v25  ;;  %v1120_v25 = vld [vmem:[%s3000_s9 + $0x260] sm:$0xff] }
 0x378   : > { %1747 = vmatprep.subr.mxu1 %v1102_v26  ;;  %v1152_v26 = vld [vmem:[%s3000_s9 + $0x360] sm:$0xff] }
 0x379   : > { %1748 = vmatpush3.msra.mxu1 %v1086_v27  ;;  %v1135_v27 = vld [vmem:[%s3000_s9 + $0x2d8] sm:$0xff] }
 0x37a   : > { %1749 = vmatprep.subr.mxu1 %v1101_v28  ;;  %v1167_v28 = vld [vmem:[%s3000_s9 + $0x3d8] sm:$0xff] }
 0x37b   : > { %1750 = vmatpush3.msra.mxu1 %v1085_v29  ;;  %v1119_v29 = vld [vmem:[%s3000_s9 + $0x258] sm:$0xff] }
 0x37c   : > { %1751 = vmatprep.subr.mxu1 %v1100_v30  ;;  %v1151_v30 = vld [vmem:[%s3000_s9 + $0x358] sm:$0xff] }
 0x37d   : > { %1752 = vmatpush3.msra.mxu1 %v1084_v31  ;;  %v1134_v31 = vld [vmem:[%s3000_s9 + $0x2d0] sm:$0xff] }
 0x37e   : > { %1753 = vmatprep.subr.mxu1 %v1099_v32  ;;  %v1166_v32 = vld [vmem:[%s3000_s9 + $0x3d0] sm:$0xff] }
 0x37f   : > { %1754 = vmatpush3.msra.mxu1 %v1083_v33  ;;  %v1118_v33 = vld [vmem:[%s3000_s9 + $0x250] sm:$0xff] }
 0x380   : > { %1755 = vmatprep.subr.mxu1 %v1098_v34  ;;  %v1150_v34 = vld [vmem:[%s3000_s9 + $0x350] sm:$0xff] }
 0x381   : > { %1756 = vmatpush3.msra.mxu1 %v1082_v35  ;;  %v1133_v35 = vld [vmem:[%s3000_s9 + $0x2c8] sm:$0xff] }
 0x382   : > { %1757 = vmatprep.subr.mxu1 %v1097_v36  ;;  %v1165_v36 = vld [vmem:[%s3000_s9 + $0x3c8] sm:$0xff] }
 0x383   : > { %1758 = vmatpush3.msra.mxu1 %v1081_v37  ;;  %v1117_v37 = vld [vmem:[%s3000_s9 + $0x248] sm:$0xff] }
 0x384   : > { %1759 = vmatprep.subr.mxu1 %v1096_v38  ;;  %v1149_v38 = vld [vmem:[%s3000_s9 + $0x348] sm:$0xff] }
 0x385   : > { %1760 = vmatpush3.msra.mxu1 %v1080_v39  ;;  %v1132_v39 = vld [vmem:[%s3000_s9 + $0x2c0] sm:$0xff] }
 0x386   : > { %1761 = vmatprep.subr.mxu1 %v1095_v40  ;;  %v1164_v40 = vld [vmem:[%s3000_s9 + $0x3c0] sm:$0xff] }
 0x387   : > { %1762 = vmatpush3.msra.mxu1 %v1079_v42  ;;  %v1148_v42 = vld [vmem:[%s3000_s9 + $0x340] sm:$0xff] }
 0x388   : > { %1763 = vmatprep.subr.mxu1 %v1094_v44  ;;  %v1163_v44 = vld [vmem:[%s3000_s9 + $0x3b8] sm:$0xff] }
 0x389   : > { %1764 = vmatpush3.msra.mxu1 %v1078_v46  ;;  %v1147_v46 = vld [vmem:[%s3000_s9 + $0x338] sm:$0xff] }
 0x38a   : > { %1765 = vmatprep.subr.mxu1 %v1093_v48  ;;  %v1162_v48 = vld [vmem:[%s3000_s9 + $0x3b0] sm:$0xff] }
 0x38b   : > { %1766 = vmatpush3.msra.mxu1 %v1077_v50  ;;  %v1146_v50 = vld [vmem:[%s3000_s9 + $0x330] sm:$0xff] }
 0x38c   : > { %1767 = vmatprep.subr.mxu1 %v1092_v52  ;;  %v1161_v52 = vld [vmem:[%s3000_s9 + $0x3a8] sm:$0xff] }
 0x38d   : > { %1768 = vmatpush3.msra.mxu1 %v1076_v54  ;;  %v1145_v54 = vld [vmem:[%s3000_s9 + $0x328] sm:$0xff] }
 0x38e   : > { %1807 = vmatprep.subr.mxu1 %v1171_v56  ;;  %v1160_v56 = vld [vmem:[%s3000_s9 + $0x3a0] sm:$0xff] }
 0x42e   : > { %v1039_v60 = vpop.f32.mrf.mxu1 }
 0x42f   : > { %v1040_v62 = vadd.f32 %v1655_v59, %v1039_v60  ;;  %v1144_v59 = vld [vmem:[%s3000_s9 + $0x320] sm:$0xff]  ;;  %v1127_v60 = vld [vmem:[%s3000_s9 + $0x298] sm:$0xff] }
 0x430   : > { %v1041_v3 = vpop.f32.mrf.mxu1 }
 0x431   : > { %v2727_v4 = vmax.f32 %v1040_v62, 0.0  ;;  %v1111_v62 = vld [vmem:[%s3000_s9 + $0x218] sm:$0xff]  ;;  %v1110_v3 = vld [vmem:[%s3000_s9 + $0x210] sm:$0xff] }
 0x433   : > { %v1181_v7 = vrot.slane %v2727_v4, %v1180_v61  ;;  %v1189_v8 = vrot.slane %v2727_v4, %v1188_v63  ;;  %v1177_v9 = vrot.slane %v2727_v4, %v1176_v0  ;;  %v1185_v10 = vrot.slane %v2727_v4, %v1184_v2  ;;  %v1159_v61 = vld [vmem:[%s3000_s9 + $0x398] sm:$0xff]  ;;  %v1126_v0 = vld [vmem:[%s3000_s9 + $0x290] sm:$0xff] }
 0x434   : > { %v1197_v14 = vrot.slane %v2727_v4, %v1196_v5  ;;  %v1205_v16 = vrot.slane %v2727_v4, %v1204_v6  ;;  %v1143_v63 = vld [vmem:[%s3000_s9 + $0x318] sm:$0xff]  ;;  %v1158_v2 = vld [vmem:[%s3000_s9 + $0x390] sm:$0xff]  ;;  %v1125_v6 = vld [vmem:[%s3000_s9 + $0x288] sm:$0xff] }
 0x435   : > { %1278 = vmatprep.mubr.f32.mxu0 %v1181_v7  ;;  %1348 = vmatprep.mubr.f32.mxu1 %v1189_v8  ;;  %v1142_v5 = vld [vmem:[%s3000_s9 + $0x310] sm:$0xff]  ;;  %v1157_v7 = vld [vmem:[%s3000_s9 + $0x388] sm:$0xff] }
 0x436   : > { %1279 = vmatmul.mubr.f32.vlgmr.msra.gmra.mxu0 %v1177_v9  ;;  %1349 = vmatmul.mubr.f32.vlgmr.msra.gmra.mxu1 %v1185_v10  ;;  %v1109_v8 = vld [vmem:[%s3000_s9 + $0x208] sm:$0xff]  ;;  %v1192_v10 = vsub.s32 4, %v2718_v58 }
 0x437   : > { %1773 = vmatpush3.msra.mxu0 %v1123_v11  ;;  %1808 = vmatpush3.msra.mxu1 %v1155_v12  ;;  %v1141_v9 = vld [vmem:[%s3000_s9 + $0x308] sm:$0xff]  ;;  %v1200_v11 = vsub.s32 6, %v2718_v58  ;;  %v1124_v12 = vld [vmem:[%s3000_s9 + $0x280] sm:$0xff] }
 0x438   : > { %1774 = vmatprep.subr.mxu0 %v1138_v13  ;;  %1418 = vmatprep.mubr.f32.mxu0 %v1197_v14  ;;  %v1156_v13 = vld [vmem:[%s3000_s9 + $0x380] sm:$0xff] }
 0x439   : > { %1809 = vmatprep.subr.mxu1 %v1170_v15  ;;  %1488 = vmatprep.mubr.f32.mxu1 %v1205_v16  ;;  %v1108_v14 = vld [vmem:[%s3000_s9 + $0x200] sm:$0xff]  ;;  %v1193_v15 = vrot.slane %v2727_v4, %v1192_v10  ;;  %v1201_v16 = vrot.slane %v2727_v4, %v1200_v11  ;;  %v1497_v4 = vld [vmem:[%s3002_s11 + $0x10] sm:$0xff] }
 0x43a   : > { %1775 = vmatpush3.msra.mxu0 %v1122_v17  ;;  %1810 = vmatpush3.msra.mxu1 %v1154_v18  ;;  %v1140_v58 = vld [vmem:[%s3000_s9 + $0x300] sm:$0xff]  ;;  %v1498_v17 = vld [vmem:[%s3002_s11 + $0x18] sm:$0xff]  ;;  %v1496_v18 = vld [vmem:[%s3002_s11 + $0x8] sm:$0xff] }
 0x43b   : > { %1776 = vmatprep.subr.mxu0 %v1137_v19  ;;  %1811 = vmatprep.subr.mxu1 %v1169_v20  ;;  %v1495_v19 = vld [vmem:[%s3002_s11] sm:$0xff] }
 0x43c   : > { %1777 = vmatpush3.msra.mxu0 %v1121_v21  ;;  %1812 = vmatpush3.msra.mxu1 %v1153_v22 }
 0x43d   : > { %1778 = vmatprep.subr.mxu0 %v1136_v23  ;;  %1813 = vmatprep.subr.mxu1 %v1168_v24  ;;  %v1172_v24 = vld [vmem:[%s3001_s10] sm:$0x1] }
 0x43e   : > { %1779 = vmatpush3.msra.mxu0 %v1120_v25  ;;  %1814 = vmatpush3.msra.mxu1 %v1152_v26 }
 0x43f   : > { %1780 = vmatprep.subr.mxu0 %v1135_v27  ;;  %1815 = vmatprep.subr.mxu1 %v1167_v28 }
 0x440   : > { %1781 = vmatpush3.msra.mxu0 %v1119_v29  ;;  %1816 = vmatpush3.msra.mxu1 %v1151_v30 }
 0x441   : > { %1782 = vmatprep.subr.mxu0 %v1134_v31  ;;  %1817 = vmatprep.subr.mxu1 %v1166_v32 }
 0x442   : > { %1783 = vmatpush3.msra.mxu0 %v1118_v33  ;;  %1818 = vmatpush3.msra.mxu1 %v1150_v34 }
 0x443   : > { %1784 = vmatprep.subr.mxu0 %v1133_v35  ;;  %1819 = vmatprep.subr.mxu1 %v1165_v36 }
 0x444   : > { %1785 = vmatpush3.msra.mxu0 %v1117_v37  ;;  %1820 = vmatpush3.msra.mxu1 %v1149_v38  ;;  %v1499_v37 = vld [vmem:[%s3003_s12] sm:$0x1] }
 0x445   : > { %1786 = vmatprep.subr.mxu0 %v1132_v39  ;;  %1821 = vmatprep.subr.mxu1 %v1164_v40 }
 0x446   : > { %1787 = vmatpush3.msra.mxu0 %v1116_v41  ;;  %1822 = vmatpush3.msra.mxu1 %v1148_v42 }
 0x447   : > { %1788 = vmatprep.subr.mxu0 %v1131_v43  ;;  %1823 = vmatprep.subr.mxu1 %v1163_v44 }
 0x448   : > { %1789 = vmatpush3.msra.mxu0 %v1115_v45  ;;  %1824 = vmatpush3.msra.mxu1 %v1147_v46 }
 0x449   : > { %1790 = vmatprep.subr.mxu0 %v1130_v47  ;;  %1825 = vmatprep.subr.mxu1 %v1162_v48 }
 0x44a   : > { %1791 = vmatpush3.msra.mxu0 %v1114_v49  ;;  %1826 = vmatpush3.msra.mxu1 %v1146_v50 }
 0x44b   : > { %1792 = vmatprep.subr.mxu0 %v1129_v51  ;;  %1827 = vmatprep.subr.mxu1 %v1161_v52 }
 0x44c   : > { %1793 = vmatpush3.msra.mxu0 %v1113_v53  ;;  %1828 = vmatpush3.msra.mxu1 %v1145_v54 }
 0x44d   : > { %1794 = vmatprep.subr.mxu0 %v1128_v55  ;;  %1829 = vmatprep.subr.mxu1 %v1160_v56 }
 0x44e   : > { %1795 = vmatpush3.msra.mxu0 %v1112_v57  ;;  %1830 = vmatpush3.msra.mxu1 %v1144_v59 }
 0x44f   : > { %1796 = vmatprep.subr.mxu0 %v1127_v60  ;;  %1831 = vmatprep.subr.mxu1 %v1159_v61 }
 0x450   : > { %1797 = vmatpush3.msra.mxu0 %v1111_v62  ;;  %1832 = vmatpush3.msra.mxu1 %v1143_v63 }
 0x451   : > { %1798 = vmatprep.subr.mxu0 %v1126_v0  ;;  %1833 = vmatprep.subr.mxu1 %v1158_v2 }
 0x452   : > { %1799 = vmatpush3.msra.mxu0 %v1110_v3  ;;  %1834 = vmatpush3.msra.mxu1 %v1142_v5 }
 0x453   : > { %1800 = vmatprep.subr.mxu0 %v1125_v6  ;;  %1835 = vmatprep.subr.mxu1 %v1157_v7 }
 0x454   : > { %1801 = vmatpush3.msra.mxu0 %v1109_v8  ;;  %1836 = vmatpush3.msra.mxu1 %v1141_v9 }
 0x455   : > { %1802 = vmatprep.subr.mxu0 %v1124_v12  ;;  %1837 = vmatprep.subr.mxu1 %v1156_v13 }
 0x456   : > { %1803 = vmatpush3.msra.mxu0 %v1108_v14  ;;  %1838 = vmatpush3.msra.mxu1 %v1140_v58 }
 0x457   : > { %1419 = vmatmul.mubr.f32.vlgmr.msra.gmra.mxu0 %v1193_v15  ;;  %1489 = vmatmul.mubr.f32.vlgmr.msra.gmra.mxu1 %v1201_v16 }
 0x458   : > { %1931 = vmatprep.subr.mxu0 %v2048_v1  ;;  %1939 = vmatprep.mubr.msk.f32.mxu0 %vm2051_vm12, %v2048_v1 }
 0x459   : > { %1932 = vmatpush3.msra.mxu0 %v1498_v17 }
 0x45a   : > { %1933 = vmatprep.subr.mxu0 %v2048_v1 }
 0x45b   : > { %1934 = vmatpush3.msra.mxu0 %v1497_v4 }
 0x45c   : > { %1935 = vmatprep.subr.mxu0 %v2048_v1 }
 0x45d   : > { %1936 = vmatpush3.msra.mxu0 %v1496_v18 }
 0x45e   : > { %1937 = vmatprep.subr.mxu0 %v2048_v1 }
 0x45f   : > { %1938 = vmatpush3.msra.mxu0 %v1495_v19 }
 0x4f6   : > { %v1734_v20 = vpop.f32.mrf.mxu0  ;;  %v1769_v22 = vpop.f32.mrf.mxu1 }
 0x4f8   : > { %v1735_v21 = vpop.f32.mrf.mxu0  ;;  %v1770_v25 = vpop.f32.mrf.mxu1 }
 0x4f9   : > { %v1736_v23 = vadd.f32 %v1735_v21, %v1734_v20  ;;  %v1771_v1 = vadd.f32 %v1770_v25, %v1769_v22 }
 0x4fb   : > { %v1281_v26 = vadd.f32 %v1736_v23, %v1172_v24 }
 0x4fd   : > { %v1351_v31 = vadd.f32 %v1771_v1, %v1281_v26 }
 0x517   : > { %v1804_v27 = vpop.f32.mrf.mxu0  ;;  %v1839_v28 = vpop.f32.mrf.mxu1 }
 0x519   : > { %v1805_v29 = vpop.f32.mrf.mxu0  ;;  %v1840_v30 = vpop.f32.mrf.mxu1 }
 0x51a   : > { %v1806_v32 = vadd.f32 %v1805_v29, %v1804_v27  ;;  %v1841_v34 = vadd.f32 %v1840_v30, %v1839_v28 }
 0x51c   : > { %v1421_v33 = vadd.f32 %v1806_v32, %v1351_v31 }
 0x51e   : > { %v1491_v35 = vadd.f32 %v1841_v34, %v1421_v33 }
 0x520   : > { %v1494_v36 = vmax.f32 %v1491_v35, 0.0 }
 0x522   : > { %1940 = vmatmul.mubr.msk.f32.vlgmr.msra.gmra.mxu0 %vm1500_vm2, %v1494_v36 }
 0x5e2   : > { %v1570_v38 = vpop.f32.mrf.mxu0 }
 0x5e3   : > { %v1571_v39 = vadd.f32 %v1570_v38, %v1499_v37 }
 0x5e4   : > { %v1941_v40 = vpop.f32.mrf.mxu0 }
 0x5e5   : > { %1575 = vst.msk [vmem:[%s432_s0] sm:$0x1] %vm1574_vm3, %v1571_v39 }
 0x5e6   : > { %1999 = shalt.err (!%p1996_p3)
}
 0x5e7   : > { %s2000_s23 = scalar_lea.hbm %s2956_s15, 16  ;;  %s2004_s17 = scalar_lea.hbm %s3004_s13, 32 }
 0x5e8   : > { %p2001_p4 = scmp.ne.s32.totalorder %s2956_s15, %s2000_s23  ;;  %p2005_p9 = scmp.lt.s32.totalorder %s2956_s15, %s3004_s13 }
 0x5e9   : > { %p2006_p10 = scmp.lt.s32.totalorder %s2004_s17, %s2000_s23 }
 0x5ea   : > { %p2002_p7 = pnand %p2001_p4, %p2162_p5 }
 0x5eb   : > { %p2007_p11 = por %p2006_p10, %p2005_p9 }
 0x5ec   : > { %p2003_p8 = pneg %p2002_p7 }
 0x5ee   : > { %p2008_p12 = pnand %p2007_p11, %p2003_p8 }
 0x5f0   : > { %2011 = shalt.err (!%p2008_p12)
}
 0x5f1   : > { %1942 = dma.vmem_to_hbm [thread:$0]  (%p2162_p5), %s1590_s24, 16, %s2956_s15, %s1577_s16  }
 0x5f2 PF: > { %p1948_p13 = scmp.ge.s32.totalorder %s2046_s28, 2  ;;  %s1601_s1 = sand.u32 1, %s2034_s25  }
 0x5f3   : > { %s1602_s21 = scalar_lea.sflag [#allocation5], %s1601_s1 }
 0x5f4   : > { %p1945_p0 = pnand %p1948_p13, %p2166_p6 }
 0x5f6   : > { %p1946_p1 = pneg %p1945_p0 }
 0x5f8   : > { %2029 = dma.done.wait (%p1946_p1), %s1602_s21, 16  }
 0x5f9   : > { %2031 = vsyncadd (%p1946_p1), %s1602_s21, 4294967280  ;;  %s3012_s22 = sld [smem:[#allocation7_spill]]  ;;  %p23_p2 = scmp.ge.s32.totalorder %s2149_s14, 4  }
 0x5fa   : > { %s3013_s25 = smov %s2038_s26  ;;  %s3014_s26 = smov %s2042_s27 }
 0x5fb   : > { %s3016_s28 = smov %s2149_s14  ;;  %25 = sbr.rel (!%p23_p2) target bundleno = 6 (0x6), region = 107 }
 0x5ff   : > { %s3015_s27 = smov %s3012_s22 }
 0x600   :  { %1606 = vsyncpa [#allocation5], 1 }
 0x601   :  { %1608 = vsyncpa [#allocation5 + $0x1], 1 }

</bundles_post_ra>
